<compile_context>
chip_gen: v6e
topology: v6e:2x2x1
jax: 0.10.0
libtpu: 0.0.40
codegen_flags: <defaults>
</compile_context>

<pallas_src>
import functools
import math

import jax
import jax.numpy as jnp
from jax.experimental import pallas as pl
from jax.experimental.pallas import tpu as pltpu

KERNEL_SIZE = 7
PAD = 3  # kernel_size == 7 -> padding == 3


def spatial_attention_kernel(x_ref, w_ref, o_ref, *, C, H, W, L):
    """x_ref: (Nb, C, H*W) VMEM, w_ref: (2*K*K,) SMEM, o_ref: (Nb, 1, H*W)."""
    Nb = x_ref.shape[0]
    HW = H * W

    # ---- fused channel mean + max (single pass over C, x read once) --------
    v = x_ref[:, 0, :]
    s = v
    mx = v
    for c in range(1, C):
        v = x_ref[:, c, :]
        s = s + v
        mx = jnp.maximum(mx, v)
    avg = s * (1.0 / C)                                   # (Nb, HW)

    # ---- zero-extend flattened spatial axis to L (>= (H+4)*W, 128-aligned) -
    # Rows [H, L/W) are zeros; together with the per-kw column masks below
    # this realizes the 'same' zero padding of the convolution.
    tail = jnp.zeros((Nb, L - HW), jnp.float32)
    chans = (jnp.concatenate([avg, tail], axis=-1),       # conv input channel 0
             jnp.concatenate([mx, tail], axis=-1))        # conv input channel 1

    col = jax.lax.broadcasted_iota(jnp.int32, (Nb, L), 1) % W

    # ---- conv: hoisted lane shifts + 7 independent accumulators ------------
    # acc[j] = sum_{c,dw} weight[c, j, dw+PAD] * shift_by_dw(channel_c)
    acc = [None] * KERNEL_SIZE
    for c in range(2):
        pc = chans[c]
        for dw in range(-PAD, PAD + 1):
            if dw == 0:
                y = pc
            else:
                # y[p] = pc[p + dw] if the shift stays inside the row, else 0.
                rolled = pltpu.roll(pc, (-dw) % L, axis=1)
                valid = (col >= -dw) & (col < W - dw)
                y = jnp.where(valid, rolled, 0.0)
            base = c * KERNEL_SIZE * KERNEL_SIZE + (dw + PAD)
            for j in range(KERNEL_SIZE):                  # j = dh + PAD
                wv = w_ref[base + j * KERNEL_SIZE]
                t = wv * y
                acc[j] = t if acc[j] is None else acc[j] + t

    # Row (kh) shifts: acc[j] must be read at flat offset (j - PAD) * W.
    parts = []
    for j in range(KERNEL_SIZE):
        dh = j - PAD
        sh = (-dh * W) % L
        parts.append(acc[j] if sh == 0 else pltpu.roll(acc[j], sh, axis=1))
    # Balanced-tree sum (ILP-friendly).
    while len(parts) > 1:
        nxt = [parts[i] + parts[i + 1] for i in range(0, len(parts) - 1, 2)]
        if len(parts) % 2 == 1:
            nxt.append(parts[-1])
        parts = nxt
    conv = parts[0]                                       # (Nb, L)

    # Valid output region is the first H*W lanes (aligned prefix slice).
    o_ref[:, 0, :] = jax.nn.sigmoid(conv[:, :HW])


def spatial_attention(x, weight, *, block_n=8):
    """x: (N, C, H, W), weight: (1, 2, K, K) -> (N, 1, H, W) float32."""
    N, C, H, W = x.shape
    assert weight.shape == (1, 2, KERNEL_SIZE, KERNEL_SIZE)
    assert W >= PAD, "spatial width must be >= conv padding"
    HW = H * W

    # Flattened working length L = R*W with R >= H + PAD + 1 rows (so every
    # shifted access lands either on real pixels or on the zero tail) and L a
    # multiple of 128 so the lane rotations stay vreg-aligned.
    step = 128 // math.gcd(W, 128)
    R = -(-(H + PAD + 1) // step) * step
    L = R * W

    # Batch block: Nb elements per grid step.
    Nb = max(1, min(N, block_n))
    N_pad = -(-N // Nb) * Nb
    xf = x.astype(jnp.float32)
    if N_pad != N:
        xf = jnp.pad(xf, ((0, N_pad - N), (0, 0), (0, 0), (0, 0)))
    x2 = xf.reshape(N_pad, C, HW)                         # lane-dense layout
    w_flat = weight.reshape(-1).astype(jnp.float32)       # (2*K*K,)

    kern = functools.partial(spatial_attention_kernel, C=C, H=H, W=W, L=L)

    cost = pl.CostEstimate(
        flops=N * HW * (2 * C + 4 * KERNEL_SIZE * KERNEL_SIZE),
        transcendentals=N * HW,
        bytes_accessed=(N * C * HW + N * HW + w_flat.size) * 4,
    )

    out = pl.pallas_call(
        kern,
        out_shape=jax.ShapeDtypeStruct((N_pad, 1, HW), jnp.float32),
        grid_spec=pltpu.PrefetchScalarGridSpec(
            num_scalar_prefetch=0,
            grid=(N_pad // Nb,),
            in_specs=[
                pl.BlockSpec((Nb, C, HW), lambda n: (n, 0, 0)),
                pl.BlockSpec(memory_space=pltpu.MemorySpace.SMEM),
            ],
            out_specs=pl.BlockSpec((Nb, 1, HW), lambda n: (n, 0, 0)),
        ),
        compiler_params=pltpu.CompilerParams(
            dimension_semantics=("parallel",),
        ),
        cost_estimate=cost,
    )(x2, w_flat)

    return out[:N].reshape(N, 1, H, W)


def spatial_attention_reference(x, weight):
    """Pure-JAX reference mirroring the PyTorch forward."""
    avg_out = jnp.mean(x, axis=1, keepdims=True)
    max_out = jnp.max(x, axis=1, keepdims=True)
    xx = jnp.concatenate([avg_out, max_out], axis=1)
    y = jax.lax.conv_general_dilated(
        xx, weight,
        window_strides=(1, 1),
        padding=((PAD, PAD), (PAD, PAD)),
        dimension_numbers=("NCHW", "OIHW", "NCHW"),
    )
    return jax.nn.sigmoid(y)


if __name__ == "__main__":
    key = jax.random.PRNGKey(0)
    kx, kw = jax.random.split(key)

    N, C, H, W = 2, 4, 16, 16
    x = jax.random.normal(kx, (N, C, H, W), dtype=jnp.float32)
    # Deterministic Conv2d(2, 1, 7, bias=False) weight (synthetic init).
    weight = 0.1 * jax.random.normal(
        kw, (1, 2, KERNEL_SIZE, KERNEL_SIZE), dtype=jnp.float32)

    out = jax.block_until_ready(spatial_attention(x, weight))
    ref = spatial_attention_reference(x, weight)

    assert out.shape == (N, 1, H, W)
    max_err = float(jnp.max(jnp.abs(out - ref)))
    assert max_err < 1e-5, f"max abs err = {max_err}"

    print("KERNEL_OK")
</pallas_src>

<mosaic_0001>
module attributes {stable_mosaic.version = 11 : i64} {
  func.func @spatial_attention_kernel(%arg0: i32, %arg1: memref<2x4x256xf32, #tpu.memory_space<vmem>>, %arg2: memref<98xf32, #tpu.memory_space<smem>>, %arg3: memref<2x1x256xf32, #tpu.memory_space<vmem>>) attributes {dimension_semantics = [#tpu.dimension_semantics<parallel>], iteration_bounds = array<i64: 1>, scalar_prefetch = 0 : i64, scratch_operands = 0 : i64, tpu.core_type = #tpu.core_type<tc>, window_params = [{transform_indices = @transform_0, window_bounds = array<i64: 2, 4, 256>}, {transform_indices = @transform_1, window_bounds = array<i64: 98>}, {transform_indices = @transform_2, window_bounds = array<i64: 2, 1, 256>}]} {
    %c0 = arith.constant 0 : index
    %c0_0 = arith.constant 0 : index
    %c0_1 = arith.constant 0 : index
    %0 = vector.load %arg1[%c0, %c0_0, %c0_1] : memref<2x4x256xf32, #tpu.memory_space<vmem>>, vector<2x1x256xf32>
    %1 = vector.shape_cast %0 : vector<2x1x256xf32> to vector<2x256xf32>
    %c0_2 = arith.constant 0 : index
    %c1 = arith.constant 1 : index
    %c0_3 = arith.constant 0 : index
    %2 = vector.load %arg1[%c0_2, %c1, %c0_3] : memref<2x4x256xf32, #tpu.memory_space<vmem>>, vector<2x1x256xf32>
    %3 = vector.shape_cast %2 : vector<2x1x256xf32> to vector<2x256xf32>
    %4 = arith.addf %1, %3 : vector<2x256xf32>
    %5 = arith.maximumf %1, %3 : vector<2x256xf32>
    %c0_4 = arith.constant 0 : index
    %c2 = arith.constant 2 : index
    %c0_5 = arith.constant 0 : index
    %6 = vector.load %arg1[%c0_4, %c2, %c0_5] : memref<2x4x256xf32, #tpu.memory_space<vmem>>, vector<2x1x256xf32>
    %7 = vector.shape_cast %6 : vector<2x1x256xf32> to vector<2x256xf32>
    %8 = arith.addf %4, %7 : vector<2x256xf32>
    %9 = arith.maximumf %5, %7 : vector<2x256xf32>
    %c0_6 = arith.constant 0 : index
    %c3 = arith.constant 3 : index
    %c0_7 = arith.constant 0 : index
    %10 = vector.load %arg1[%c0_6, %c3, %c0_7] : memref<2x4x256xf32, #tpu.memory_space<vmem>>, vector<2x1x256xf32>
    %11 = vector.shape_cast %10 : vector<2x1x256xf32> to vector<2x256xf32>
    %12 = arith.addf %8, %11 : vector<2x256xf32>
    %13 = arith.maximumf %9, %11 : vector<2x256xf32>
    %cst = arith.constant 2.500000e-01 : f32
    %14 = vector.broadcast %cst : f32 to vector<2x256xf32>
    %15 = arith.mulf %12, %14 : vector<2x256xf32>
    %cst_8 = arith.constant 0.000000e+00 : f32
    %16 = vector.broadcast %cst_8 : f32 to vector<2x128xf32>
    %17 = tpu.concatenate %15, %16 in 1 : vector<2x256xf32>, vector<2x128xf32> -> vector<2x384xf32>
    %18 = tpu.concatenate %13, %16 in 1 : vector<2x256xf32>, vector<2x128xf32> -> vector<2x384xf32>
    %19 = tpu.iota {dimensions = array<i32: 1>} : vector<2x384xi32>
    %c16_i32 = arith.constant 16 : i32
    %c0_i32 = arith.constant 0 : i32
    %20 = arith.cmpi eq, %c16_i32, %c0_i32 : i32
    %c1_i32 = arith.constant 1 : i32
    %21 = arith.select %20, %c1_i32, %c16_i32 : i32
    %22 = vector.broadcast %21 : i32 to vector<2x384xi32>
    %23 = arith.remsi %19, %22 : vector<2x384xi32>
    %c0_i32_9 = arith.constant 0 : i32
    %24 = vector.broadcast %c0_i32_9 : i32 to vector<2x384xi32>
    %25 = arith.cmpi ne, %23, %24 : vector<2x384xi32>
    %c0_i32_10 = arith.constant 0 : i32
    %26 = vector.broadcast %c0_i32_10 : i32 to vector<2x384xi32>
    %27 = arith.cmpi slt, %23, %26 : vector<2x384xi32>
    %c0_i32_11 = arith.constant 0 : i32
    %28 = arith.cmpi slt, %21, %c0_i32_11 : i32
    %29 = vector.broadcast %28 : i1 to vector<2x384xi1>
    %30 = vector.broadcast %29 : vector<2x384xi1> to vector<2x384xi1>
    %31 = arith.xori %27, %30 : vector<2x384xi1>
    %32 = arith.andi %31, %25 : vector<2x384xi1>
    %33 = vector.broadcast %21 : i32 to vector<2x384xi32>
    %34 = arith.addi %23, %33 : vector<2x384xi32>
    %35 = arith.select %32, %34, %23 : vector<2x384xi1>, vector<2x384xi32>
    %c3_i32 = arith.constant 3 : i32
    %36 = tpu.dynamic_rotate %17 by %c3_i32 dim 1 : vector<2x384xf32>, i32 -> vector<2x384xf32>
    %c3_i32_12 = arith.constant 3 : i32
    %37 = vector.broadcast %c3_i32_12 : i32 to vector<2x384xi32>
    %38 = arith.cmpi sge, %35, %37 : vector<2x384xi32>
    %c19_i32 = arith.constant 19 : i32
    %39 = vector.broadcast %c19_i32 : i32 to vector<2x384xi32>
    %40 = arith.cmpi slt, %35, %39 : vector<2x384xi32>
    %41 = arith.andi %38, %40 : vector<2x384xi1>
    %cst_13 = arith.constant 0.000000e+00 : f32
    %42 = vector.broadcast %cst_13 : f32 to vector<2x384xf32>
    %43 = arith.select %41, %36, %42 : vector<2x384xi1>, vector<2x384xf32>
    %c0_14 = arith.constant 0 : index
    %44 = memref.load %arg2[%c0_14] : memref<98xf32, #tpu.memory_space<smem>>
    %45 = vector.broadcast %44 : f32 to vector<2x384xf32>
    %46 = arith.mulf %45, %43 : vector<2x384xf32>
    %c7 = arith.constant 7 : index
    %47 = memref.load %arg2[%c7] : memref<98xf32, #tpu.memory_space<smem>>
    %48 = vector.broadcast %47 : f32 to vector<2x384xf32>
    %49 = arith.mulf %48, %43 : vector<2x384xf32>
    %c14 = arith.constant 14 : index
    %50 = memref.load %arg2[%c14] : memref<98xf32, #tpu.memory_space<smem>>
    %51 = vector.broadcast %50 : f32 to vector<2x384xf32>
    %52 = arith.mulf %51, %43 : vector<2x384xf32>
    %c21 = arith.constant 21 : index
    %53 = memref.load %arg2[%c21] : memref<98xf32, #tpu.memory_space<smem>>
    %54 = vector.broadcast %53 : f32 to vector<2x384xf32>
    %55 = arith.mulf %54, %43 : vector<2x384xf32>
    %c28 = arith.constant 28 : index
    %56 = memref.load %arg2[%c28] : memref<98xf32, #tpu.memory_space<smem>>
    %57 = vector.broadcast %56 : f32 to vector<2x384xf32>
    %58 = arith.mulf %57, %43 : vector<2x384xf32>
    %c35 = arith.constant 35 : index
    %59 = memref.load %arg2[%c35] : memref<98xf32, #tpu.memory_space<smem>>
    %60 = vector.broadcast %59 : f32 to vector<2x384xf32>
    %61 = arith.mulf %60, %43 : vector<2x384xf32>
    %c42 = arith.constant 42 : index
    %62 = memref.load %arg2[%c42] : memref<98xf32, #tpu.memory_space<smem>>
    %63 = vector.broadcast %62 : f32 to vector<2x384xf32>
    %64 = arith.mulf %63, %43 : vector<2x384xf32>
    %c2_i32 = arith.constant 2 : i32
    %65 = tpu.dynamic_rotate %17 by %c2_i32 dim 1 : vector<2x384xf32>, i32 -> vector<2x384xf32>
    %c2_i32_15 = arith.constant 2 : i32
    %66 = vector.broadcast %c2_i32_15 : i32 to vector<2x384xi32>
    %67 = arith.cmpi sge, %35, %66 : vector<2x384xi32>
    %c18_i32 = arith.constant 18 : i32
    %68 = vector.broadcast %c18_i32 : i32 to vector<2x384xi32>
    %69 = arith.cmpi slt, %35, %68 : vector<2x384xi32>
    %70 = arith.andi %67, %69 : vector<2x384xi1>
    %cst_16 = arith.constant 0.000000e+00 : f32
    %71 = vector.broadcast %cst_16 : f32 to vector<2x384xf32>
    %72 = arith.select %70, %65, %71 : vector<2x384xi1>, vector<2x384xf32>
    %c1_17 = arith.constant 1 : index
    %73 = memref.load %arg2[%c1_17] : memref<98xf32, #tpu.memory_space<smem>>
    %74 = vector.broadcast %73 : f32 to vector<2x384xf32>
    %75 = arith.mulf %74, %72 : vector<2x384xf32>
    %76 = arith.addf %46, %75 : vector<2x384xf32>
    %c8 = arith.constant 8 : index
    %77 = memref.load %arg2[%c8] : memref<98xf32, #tpu.memory_space<smem>>
    %78 = vector.broadcast %77 : f32 to vector<2x384xf32>
    %79 = arith.mulf %78, %72 : vector<2x384xf32>
    %80 = arith.addf %49, %79 : vector<2x384xf32>
    %c15 = arith.constant 15 : index
    %81 = memref.load %arg2[%c15] : memref<98xf32, #tpu.memory_space<smem>>
    %82 = vector.broadcast %81 : f32 to vector<2x384xf32>
    %83 = arith.mulf %82, %72 : vector<2x384xf32>
    %84 = arith.addf %52, %83 : vector<2x384xf32>
    %c22 = arith.constant 22 : index
    %85 = memref.load %arg2[%c22] : memref<98xf32, #tpu.memory_space<smem>>
    %86 = vector.broadcast %85 : f32 to vector<2x384xf32>
    %87 = arith.mulf %86, %72 : vector<2x384xf32>
    %88 = arith.addf %55, %87 : vector<2x384xf32>
    %c29 = arith.constant 29 : index
    %89 = memref.load %arg2[%c29] : memref<98xf32, #tpu.memory_space<smem>>
    %90 = vector.broadcast %89 : f32 to vector<2x384xf32>
    %91 = arith.mulf %90, %72 : vector<2x384xf32>
    %92 = arith.addf %58, %91 : vector<2x384xf32>
    %c36 = arith.constant 36 : index
    %93 = memref.load %arg2[%c36] : memref<98xf32, #tpu.memory_space<smem>>
    %94 = vector.broadcast %93 : f32 to vector<2x384xf32>
    %95 = arith.mulf %94, %72 : vector<2x384xf32>
    %96 = arith.addf %61, %95 : vector<2x384xf32>
    %c43 = arith.constant 43 : index
    %97 = memref.load %arg2[%c43] : memref<98xf32, #tpu.memory_space<smem>>
    %98 = vector.broadcast %97 : f32 to vector<2x384xf32>
    %99 = arith.mulf %98, %72 : vector<2x384xf32>
    %100 = arith.addf %64, %99 : vector<2x384xf32>
    %c1_i32_18 = arith.constant 1 : i32
    %101 = tpu.dynamic_rotate %17 by %c1_i32_18 dim 1 : vector<2x384xf32>, i32 -> vector<2x384xf32>
    %c1_i32_19 = arith.constant 1 : i32
    %102 = vector.broadcast %c1_i32_19 : i32 to vector<2x384xi32>
    %103 = arith.cmpi sge, %35, %102 : vector<2x384xi32>
    %c17_i32 = arith.constant 17 : i32
    %104 = vector.broadcast %c17_i32 : i32 to vector<2x384xi32>
    %105 = arith.cmpi slt, %35, %104 : vector<2x384xi32>
    %106 = arith.andi %103, %105 : vector<2x384xi1>
    %cst_20 = arith.constant 0.000000e+00 : f32
    %107 = vector.broadcast %cst_20 : f32 to vector<2x384xf32>
    %108 = arith.select %106, %101, %107 : vector<2x384xi1>, vector<2x384xf32>
    %c2_21 = arith.constant 2 : index
    %109 = memref.load %arg2[%c2_21] : memref<98xf32, #tpu.memory_space<smem>>
    %110 = vector.broadcast %109 : f32 to vector<2x384xf32>
    %111 = arith.mulf %110, %108 : vector<2x384xf32>
    %112 = arith.addf %76, %111 : vector<2x384xf32>
    %c9 = arith.constant 9 : index
    %113 = memref.load %arg2[%c9] : memref<98xf32, #tpu.memory_space<smem>>
    %114 = vector.broadcast %113 : f32 to vector<2x384xf32>
    %115 = arith.mulf %114, %108 : vector<2x384xf32>
    %116 = arith.addf %80, %115 : vector<2x384xf32>
    %c16 = arith.constant 16 : index
    %117 = memref.load %arg2[%c16] : memref<98xf32, #tpu.memory_space<smem>>
    %118 = vector.broadcast %117 : f32 to vector<2x384xf32>
    %119 = arith.mulf %118, %108 : vector<2x384xf32>
    %120 = arith.addf %84, %119 : vector<2x384xf32>
    %c23 = arith.constant 23 : index
    %121 = memref.load %arg2[%c23] : memref<98xf32, #tpu.memory_space<smem>>
    %122 = vector.broadcast %121 : f32 to vector<2x384xf32>
    %123 = arith.mulf %122, %108 : vector<2x384xf32>
    %124 = arith.addf %88, %123 : vector<2x384xf32>
    %c30 = arith.constant 30 : index
    %125 = memref.load %arg2[%c30] : memref<98xf32, #tpu.memory_space<smem>>
    %126 = vector.broadcast %125 : f32 to vector<2x384xf32>
    %127 = arith.mulf %126, %108 : vector<2x384xf32>
    %128 = arith.addf %92, %127 : vector<2x384xf32>
    %c37 = arith.constant 37 : index
    %129 = memref.load %arg2[%c37] : memref<98xf32, #tpu.memory_space<smem>>
    %130 = vector.broadcast %129 : f32 to vector<2x384xf32>
    %131 = arith.mulf %130, %108 : vector<2x384xf32>
    %132 = arith.addf %96, %131 : vector<2x384xf32>
    %c44 = arith.constant 44 : index
    %133 = memref.load %arg2[%c44] : memref<98xf32, #tpu.memory_space<smem>>
    %134 = vector.broadcast %133 : f32 to vector<2x384xf32>
    %135 = arith.mulf %134, %108 : vector<2x384xf32>
    %136 = arith.addf %100, %135 : vector<2x384xf32>
    %c3_22 = arith.constant 3 : index
    %137 = memref.load %arg2[%c3_22] : memref<98xf32, #tpu.memory_space<smem>>
    %138 = vector.broadcast %137 : f32 to vector<2x384xf32>
    %139 = arith.mulf %138, %17 : vector<2x384xf32>
    %140 = arith.addf %112, %139 : vector<2x384xf32>
    %c10 = arith.constant 10 : index
    %141 = memref.load %arg2[%c10] : memref<98xf32, #tpu.memory_space<smem>>
    %142 = vector.broadcast %141 : f32 to vector<2x384xf32>
    %143 = arith.mulf %142, %17 : vector<2x384xf32>
    %144 = arith.addf %116, %143 : vector<2x384xf32>
    %c17 = arith.constant 17 : index
    %145 = memref.load %arg2[%c17] : memref<98xf32, #tpu.memory_space<smem>>
    %146 = vector.broadcast %145 : f32 to vector<2x384xf32>
    %147 = arith.mulf %146, %17 : vector<2x384xf32>
    %148 = arith.addf %120, %147 : vector<2x384xf32>
    %c24 = arith.constant 24 : index
    %149 = memref.load %arg2[%c24] : memref<98xf32, #tpu.memory_space<smem>>
    %150 = vector.broadcast %149 : f32 to vector<2x384xf32>
    %151 = arith.mulf %150, %17 : vector<2x384xf32>
    %152 = arith.addf %124, %151 : vector<2x384xf32>
    %c31 = arith.constant 31 : index
    %153 = memref.load %arg2[%c31] : memref<98xf32, #tpu.memory_space<smem>>
    %154 = vector.broadcast %153 : f32 to vector<2x384xf32>
    %155 = arith.mulf %154, %17 : vector<2x384xf32>
    %156 = arith.addf %128, %155 : vector<2x384xf32>
    %c38 = arith.constant 38 : index
    %157 = memref.load %arg2[%c38] : memref<98xf32, #tpu.memory_space<smem>>
    %158 = vector.broadcast %157 : f32 to vector<2x384xf32>
    %159 = arith.mulf %158, %17 : vector<2x384xf32>
    %160 = arith.addf %132, %159 : vector<2x384xf32>
    %c45 = arith.constant 45 : index
    %161 = memref.load %arg2[%c45] : memref<98xf32, #tpu.memory_space<smem>>
    %162 = vector.broadcast %161 : f32 to vector<2x384xf32>
    %163 = arith.mulf %162, %17 : vector<2x384xf32>
    %164 = arith.addf %136, %163 : vector<2x384xf32>
    %c383_i32 = arith.constant 383 : i32
    %165 = tpu.dynamic_rotate %17 by %c383_i32 dim 1 : vector<2x384xf32>, i32 -> vector<2x384xf32>
    %c-1_i32 = arith.constant -1 : i32
    %166 = vector.broadcast %c-1_i32 : i32 to vector<2x384xi32>
    %167 = arith.cmpi sge, %35, %166 : vector<2x384xi32>
    %c15_i32 = arith.constant 15 : i32
    %168 = vector.broadcast %c15_i32 : i32 to vector<2x384xi32>
    %169 = arith.cmpi slt, %35, %168 : vector<2x384xi32>
    %170 = arith.andi %167, %169 : vector<2x384xi1>
    %cst_23 = arith.constant 0.000000e+00 : f32
    %171 = vector.broadcast %cst_23 : f32 to vector<2x384xf32>
    %172 = arith.select %170, %165, %171 : vector<2x384xi1>, vector<2x384xf32>
    %c4 = arith.constant 4 : index
    %173 = memref.load %arg2[%c4] : memref<98xf32, #tpu.memory_space<smem>>
    %174 = vector.broadcast %173 : f32 to vector<2x384xf32>
    %175 = arith.mulf %174, %172 : vector<2x384xf32>
    %176 = arith.addf %140, %175 : vector<2x384xf32>
    %c11 = arith.constant 11 : index
    %177 = memref.load %arg2[%c11] : memref<98xf32, #tpu.memory_space<smem>>
    %178 = vector.broadcast %177 : f32 to vector<2x384xf32>
    %179 = arith.mulf %178, %172 : vector<2x384xf32>
    %180 = arith.addf %144, %179 : vector<2x384xf32>
    %c18 = arith.constant 18 : index
    %181 = memref.load %arg2[%c18] : memref<98xf32, #tpu.memory_space<smem>>
    %182 = vector.broadcast %181 : f32 to vector<2x384xf32>
    %183 = arith.mulf %182, %172 : vector<2x384xf32>
    %184 = arith.addf %148, %183 : vector<2x384xf32>
    %c25 = arith.constant 25 : index
    %185 = memref.load %arg2[%c25] : memref<98xf32, #tpu.memory_space<smem>>
    %186 = vector.broadcast %185 : f32 to vector<2x384xf32>
    %187 = arith.mulf %186, %172 : vector<2x384xf32>
    %188 = arith.addf %152, %187 : vector<2x384xf32>
    %c32 = arith.constant 32 : index
    %189 = memref.load %arg2[%c32] : memref<98xf32, #tpu.memory_space<smem>>
    %190 = vector.broadcast %189 : f32 to vector<2x384xf32>
    %191 = arith.mulf %190, %172 : vector<2x384xf32>
    %192 = arith.addf %156, %191 : vector<2x384xf32>
    %c39 = arith.constant 39 : index
    %193 = memref.load %arg2[%c39] : memref<98xf32, #tpu.memory_space<smem>>
    %194 = vector.broadcast %193 : f32 to vector<2x384xf32>
    %195 = arith.mulf %194, %172 : vector<2x384xf32>
    %196 = arith.addf %160, %195 : vector<2x384xf32>
    %c46 = arith.constant 46 : index
    %197 = memref.load %arg2[%c46] : memref<98xf32, #tpu.memory_space<smem>>
    %198 = vector.broadcast %197 : f32 to vector<2x384xf32>
    %199 = arith.mulf %198, %172 : vector<2x384xf32>
    %200 = arith.addf %164, %199 : vector<2x384xf32>
    %c382_i32 = arith.constant 382 : i32
    %201 = tpu.dynamic_rotate %17 by %c382_i32 dim 1 : vector<2x384xf32>, i32 -> vector<2x384xf32>
    %c-2_i32 = arith.constant -2 : i32
    %202 = vector.broadcast %c-2_i32 : i32 to vector<2x384xi32>
    %203 = arith.cmpi sge, %35, %202 : vector<2x384xi32>
    %c14_i32 = arith.constant 14 : i32
    %204 = vector.broadcast %c14_i32 : i32 to vector<2x384xi32>
    %205 = arith.cmpi slt, %35, %204 : vector<2x384xi32>
    %206 = arith.andi %203, %205 : vector<2x384xi1>
    %cst_24 = arith.constant 0.000000e+00 : f32
    %207 = vector.broadcast %cst_24 : f32 to vector<2x384xf32>
    %208 = arith.select %206, %201, %207 : vector<2x384xi1>, vector<2x384xf32>
    %c5 = arith.constant 5 : index
    %209 = memref.load %arg2[%c5] : memref<98xf32, #tpu.memory_space<smem>>
    %210 = vector.broadcast %209 : f32 to vector<2x384xf32>
    %211 = arith.mulf %210, %208 : vector<2x384xf32>
    %212 = arith.addf %176, %211 : vector<2x384xf32>
    %c12 = arith.constant 12 : index
    %213 = memref.load %arg2[%c12] : memref<98xf32, #tpu.memory_space<smem>>
    %214 = vector.broadcast %213 : f32 to vector<2x384xf32>
    %215 = arith.mulf %214, %208 : vector<2x384xf32>
    %216 = arith.addf %180, %215 : vector<2x384xf32>
    %c19 = arith.constant 19 : index
    %217 = memref.load %arg2[%c19] : memref<98xf32, #tpu.memory_space<smem>>
    %218 = vector.broadcast %217 : f32 to vector<2x384xf32>
    %219 = arith.mulf %218, %208 : vector<2x384xf32>
    %220 = arith.addf %184, %219 : vector<2x384xf32>
    %c26 = arith.constant 26 : index
    %221 = memref.load %arg2[%c26] : memref<98xf32, #tpu.memory_space<smem>>
    %222 = vector.broadcast %221 : f32 to vector<2x384xf32>
    %223 = arith.mulf %222, %208 : vector<2x384xf32>
    %224 = arith.addf %188, %223 : vector<2x384xf32>
    %c33 = arith.constant 33 : index
    %225 = memref.load %arg2[%c33] : memref<98xf32, #tpu.memory_space<smem>>
    %226 = vector.broadcast %225 : f32 to vector<2x384xf32>
    %227 = arith.mulf %226, %208 : vector<2x384xf32>
    %228 = arith.addf %192, %227 : vector<2x384xf32>
    %c40 = arith.constant 40 : index
    %229 = memref.load %arg2[%c40] : memref<98xf32, #tpu.memory_space<smem>>
    %230 = vector.broadcast %229 : f32 to vector<2x384xf32>
    %231 = arith.mulf %230, %208 : vector<2x384xf32>
    %232 = arith.addf %196, %231 : vector<2x384xf32>
    %c47 = arith.constant 47 : index
    %233 = memref.load %arg2[%c47] : memref<98xf32, #tpu.memory_space<smem>>
    %234 = vector.broadcast %233 : f32 to vector<2x384xf32>
    %235 = arith.mulf %234, %208 : vector<2x384xf32>
    %236 = arith.addf %200, %235 : vector<2x384xf32>
    %c381_i32 = arith.constant 381 : i32
    %237 = tpu.dynamic_rotate %17 by %c381_i32 dim 1 : vector<2x384xf32>, i32 -> vector<2x384xf32>
    %c-3_i32 = arith.constant -3 : i32
    %238 = vector.broadcast %c-3_i32 : i32 to vector<2x384xi32>
    %239 = arith.cmpi sge, %35, %238 : vector<2x384xi32>
    %c13_i32 = arith.constant 13 : i32
    %240 = vector.broadcast %c13_i32 : i32 to vector<2x384xi32>
    %241 = arith.cmpi slt, %35, %240 : vector<2x384xi32>
    %242 = arith.andi %239, %241 : vector<2x384xi1>
    %cst_25 = arith.constant 0.000000e+00 : f32
    %243 = vector.broadcast %cst_25 : f32 to vector<2x384xf32>
    %244 = arith.select %242, %237, %243 : vector<2x384xi1>, vector<2x384xf32>
    %c6 = arith.constant 6 : index
    %245 = memref.load %arg2[%c6] : memref<98xf32, #tpu.memory_space<smem>>
    %246 = vector.broadcast %245 : f32 to vector<2x384xf32>
    %247 = arith.mulf %246, %244 : vector<2x384xf32>
    %248 = arith.addf %212, %247 : vector<2x384xf32>
    %c13 = arith.constant 13 : index
    %249 = memref.load %arg2[%c13] : memref<98xf32, #tpu.memory_space<smem>>
    %250 = vector.broadcast %249 : f32 to vector<2x384xf32>
    %251 = arith.mulf %250, %244 : vector<2x384xf32>
    %252 = arith.addf %216, %251 : vector<2x384xf32>
    %c20 = arith.constant 20 : index
    %253 = memref.load %arg2[%c20] : memref<98xf32, #tpu.memory_space<smem>>
    %254 = vector.broadcast %253 : f32 to vector<2x384xf32>
    %255 = arith.mulf %254, %244 : vector<2x384xf32>
    %256 = arith.addf %220, %255 : vector<2x384xf32>
    %c27 = arith.constant 27 : index
    %257 = memref.load %arg2[%c27] : memref<98xf32, #tpu.memory_space<smem>>
    %258 = vector.broadcast %257 : f32 to vector<2x384xf32>
    %259 = arith.mulf %258, %244 : vector<2x384xf32>
    %260 = arith.addf %224, %259 : vector<2x384xf32>
    %c34 = arith.constant 34 : index
    %261 = memref.load %arg2[%c34] : memref<98xf32, #tpu.memory_space<smem>>
    %262 = vector.broadcast %261 : f32 to vector<2x384xf32>
    %263 = arith.mulf %262, %244 : vector<2x384xf32>
    %264 = arith.addf %228, %263 : vector<2x384xf32>
    %c41 = arith.constant 41 : index
    %265 = memref.load %arg2[%c41] : memref<98xf32, #tpu.memory_space<smem>>
    %266 = vector.broadcast %265 : f32 to vector<2x384xf32>
    %267 = arith.mulf %266, %244 : vector<2x384xf32>
    %268 = arith.addf %232, %267 : vector<2x384xf32>
    %c48 = arith.constant 48 : index
    %269 = memref.load %arg2[%c48] : memref<98xf32, #tpu.memory_space<smem>>
    %270 = vector.broadcast %269 : f32 to vector<2x384xf32>
    %271 = arith.mulf %270, %244 : vector<2x384xf32>
    %272 = arith.addf %236, %271 : vector<2x384xf32>
    %c3_i32_26 = arith.constant 3 : i32
    %273 = tpu.dynamic_rotate %18 by %c3_i32_26 dim 1 : vector<2x384xf32>, i32 -> vector<2x384xf32>
    %c3_i32_27 = arith.constant 3 : i32
    %274 = vector.broadcast %c3_i32_27 : i32 to vector<2x384xi32>
    %275 = arith.cmpi sge, %35, %274 : vector<2x384xi32>
    %c19_i32_28 = arith.constant 19 : i32
    %276 = vector.broadcast %c19_i32_28 : i32 to vector<2x384xi32>
    %277 = arith.cmpi slt, %35, %276 : vector<2x384xi32>
    %278 = arith.andi %275, %277 : vector<2x384xi1>
    %cst_29 = arith.constant 0.000000e+00 : f32
    %279 = vector.broadcast %cst_29 : f32 to vector<2x384xf32>
    %280 = arith.select %278, %273, %279 : vector<2x384xi1>, vector<2x384xf32>
    %c49 = arith.constant 49 : index
    %281 = memref.load %arg2[%c49] : memref<98xf32, #tpu.memory_space<smem>>
    %282 = vector.broadcast %281 : f32 to vector<2x384xf32>
    %283 = arith.mulf %282, %280 : vector<2x384xf32>
    %284 = arith.addf %248, %283 : vector<2x384xf32>
    %c56 = arith.constant 56 : index
    %285 = memref.load %arg2[%c56] : memref<98xf32, #tpu.memory_space<smem>>
    %286 = vector.broadcast %285 : f32 to vector<2x384xf32>
    %287 = arith.mulf %286, %280 : vector<2x384xf32>
    %288 = arith.addf %252, %287 : vector<2x384xf32>
    %c63 = arith.constant 63 : index
    %289 = memref.load %arg2[%c63] : memref<98xf32, #tpu.memory_space<smem>>
    %290 = vector.broadcast %289 : f32 to vector<2x384xf32>
    %291 = arith.mulf %290, %280 : vector<2x384xf32>
    %292 = arith.addf %256, %291 : vector<2x384xf32>
    %c70 = arith.constant 70 : index
    %293 = memref.load %arg2[%c70] : memref<98xf32, #tpu.memory_space<smem>>
    %294 = vector.broadcast %293 : f32 to vector<2x384xf32>
    %295 = arith.mulf %294, %280 : vector<2x384xf32>
    %296 = arith.addf %260, %295 : vector<2x384xf32>
    %c77 = arith.constant 77 : index
    %297 = memref.load %arg2[%c77] : memref<98xf32, #tpu.memory_space<smem>>
    %298 = vector.broadcast %297 : f32 to vector<2x384xf32>
    %299 = arith.mulf %298, %280 : vector<2x384xf32>
    %300 = arith.addf %264, %299 : vector<2x384xf32>
    %c84 = arith.constant 84 : index
    %301 = memref.load %arg2[%c84] : memref<98xf32, #tpu.memory_space<smem>>
    %302 = vector.broadcast %301 : f32 to vector<2x384xf32>
    %303 = arith.mulf %302, %280 : vector<2x384xf32>
    %304 = arith.addf %268, %303 : vector<2x384xf32>
    %c91 = arith.constant 91 : index
    %305 = memref.load %arg2[%c91] : memref<98xf32, #tpu.memory_space<smem>>
    %306 = vector.broadcast %305 : f32 to vector<2x384xf32>
    %307 = arith.mulf %306, %280 : vector<2x384xf32>
    %308 = arith.addf %272, %307 : vector<2x384xf32>
    %c2_i32_30 = arith.constant 2 : i32
    %309 = tpu.dynamic_rotate %18 by %c2_i32_30 dim 1 : vector<2x384xf32>, i32 -> vector<2x384xf32>
    %c2_i32_31 = arith.constant 2 : i32
    %310 = vector.broadcast %c2_i32_31 : i32 to vector<2x384xi32>
    %311 = arith.cmpi sge, %35, %310 : vector<2x384xi32>
    %c18_i32_32 = arith.constant 18 : i32
    %312 = vector.broadcast %c18_i32_32 : i32 to vector<2x384xi32>
    %313 = arith.cmpi slt, %35, %312 : vector<2x384xi32>
    %314 = arith.andi %311, %313 : vector<2x384xi1>
    %cst_33 = arith.constant 0.000000e+00 : f32
    %315 = vector.broadcast %cst_33 : f32 to vector<2x384xf32>
    %316 = arith.select %314, %309, %315 : vector<2x384xi1>, vector<2x384xf32>
    %c50 = arith.constant 50 : index
    %317 = memref.load %arg2[%c50] : memref<98xf32, #tpu.memory_space<smem>>
    %318 = vector.broadcast %317 : f32 to vector<2x384xf32>
    %319 = arith.mulf %318, %316 : vector<2x384xf32>
    %320 = arith.addf %284, %319 : vector<2x384xf32>
    %c57 = arith.constant 57 : index
    %321 = memref.load %arg2[%c57] : memref<98xf32, #tpu.memory_space<smem>>
    %322 = vector.broadcast %321 : f32 to vector<2x384xf32>
    %323 = arith.mulf %322, %316 : vector<2x384xf32>
    %324 = arith.addf %288, %323 : vector<2x384xf32>
    %c64 = arith.constant 64 : index
    %325 = memref.load %arg2[%c64] : memref<98xf32, #tpu.memory_space<smem>>
    %326 = vector.broadcast %325 : f32 to vector<2x384xf32>
    %327 = arith.mulf %326, %316 : vector<2x384xf32>
    %328 = arith.addf %292, %327 : vector<2x384xf32>
    %c71 = arith.constant 71 : index
    %329 = memref.load %arg2[%c71] : memref<98xf32, #tpu.memory_space<smem>>
    %330 = vector.broadcast %329 : f32 to vector<2x384xf32>
    %331 = arith.mulf %330, %316 : vector<2x384xf32>
    %332 = arith.addf %296, %331 : vector<2x384xf32>
    %c78 = arith.constant 78 : index
    %333 = memref.load %arg2[%c78] : memref<98xf32, #tpu.memory_space<smem>>
    %334 = vector.broadcast %333 : f32 to vector<2x384xf32>
    %335 = arith.mulf %334, %316 : vector<2x384xf32>
    %336 = arith.addf %300, %335 : vector<2x384xf32>
    %c85 = arith.constant 85 : index
    %337 = memref.load %arg2[%c85] : memref<98xf32, #tpu.memory_space<smem>>
    %338 = vector.broadcast %337 : f32 to vector<2x384xf32>
    %339 = arith.mulf %338, %316 : vector<2x384xf32>
    %340 = arith.addf %304, %339 : vector<2x384xf32>
    %c92 = arith.constant 92 : index
    %341 = memref.load %arg2[%c92] : memref<98xf32, #tpu.memory_space<smem>>
    %342 = vector.broadcast %341 : f32 to vector<2x384xf32>
    %343 = arith.mulf %342, %316 : vector<2x384xf32>
    %344 = arith.addf %308, %343 : vector<2x384xf32>
    %c1_i32_34 = arith.constant 1 : i32
    %345 = tpu.dynamic_rotate %18 by %c1_i32_34 dim 1 : vector<2x384xf32>, i32 -> vector<2x384xf32>
    %c1_i32_35 = arith.constant 1 : i32
    %346 = vector.broadcast %c1_i32_35 : i32 to vector<2x384xi32>
    %347 = arith.cmpi sge, %35, %346 : vector<2x384xi32>
    %c17_i32_36 = arith.constant 17 : i32
    %348 = vector.broadcast %c17_i32_36 : i32 to vector<2x384xi32>
    %349 = arith.cmpi slt, %35, %348 : vector<2x384xi32>
    %350 = arith.andi %347, %349 : vector<2x384xi1>
    %cst_37 = arith.constant 0.000000e+00 : f32
    %351 = vector.broadcast %cst_37 : f32 to vector<2x384xf32>
    %352 = arith.select %350, %345, %351 : vector<2x384xi1>, vector<2x384xf32>
    %c51 = arith.constant 51 : index
    %353 = memref.load %arg2[%c51] : memref<98xf32, #tpu.memory_space<smem>>
    %354 = vector.broadcast %353 : f32 to vector<2x384xf32>
    %355 = arith.mulf %354, %352 : vector<2x384xf32>
    %356 = arith.addf %320, %355 : vector<2x384xf32>
    %c58 = arith.constant 58 : index
    %357 = memref.load %arg2[%c58] : memref<98xf32, #tpu.memory_space<smem>>
    %358 = vector.broadcast %357 : f32 to vector<2x384xf32>
    %359 = arith.mulf %358, %352 : vector<2x384xf32>
    %360 = arith.addf %324, %359 : vector<2x384xf32>
    %c65 = arith.constant 65 : index
    %361 = memref.load %arg2[%c65] : memref<98xf32, #tpu.memory_space<smem>>
    %362 = vector.broadcast %361 : f32 to vector<2x384xf32>
    %363 = arith.mulf %362, %352 : vector<2x384xf32>
    %364 = arith.addf %328, %363 : vector<2x384xf32>
    %c72 = arith.constant 72 : index
    %365 = memref.load %arg2[%c72] : memref<98xf32, #tpu.memory_space<smem>>
    %366 = vector.broadcast %365 : f32 to vector<2x384xf32>
    %367 = arith.mulf %366, %352 : vector<2x384xf32>
    %368 = arith.addf %332, %367 : vector<2x384xf32>
    %c79 = arith.constant 79 : index
    %369 = memref.load %arg2[%c79] : memref<98xf32, #tpu.memory_space<smem>>
    %370 = vector.broadcast %369 : f32 to vector<2x384xf32>
    %371 = arith.mulf %370, %352 : vector<2x384xf32>
    %372 = arith.addf %336, %371 : vector<2x384xf32>
    %c86 = arith.constant 86 : index
    %373 = memref.load %arg2[%c86] : memref<98xf32, #tpu.memory_space<smem>>
    %374 = vector.broadcast %373 : f32 to vector<2x384xf32>
    %375 = arith.mulf %374, %352 : vector<2x384xf32>
    %376 = arith.addf %340, %375 : vector<2x384xf32>
    %c93 = arith.constant 93 : index
    %377 = memref.load %arg2[%c93] : memref<98xf32, #tpu.memory_space<smem>>
    %378 = vector.broadcast %377 : f32 to vector<2x384xf32>
    %379 = arith.mulf %378, %352 : vector<2x384xf32>
    %380 = arith.addf %344, %379 : vector<2x384xf32>
    %c52 = arith.constant 52 : index
    %381 = memref.load %arg2[%c52] : memref<98xf32, #tpu.memory_space<smem>>
    %382 = vector.broadcast %381 : f32 to vector<2x384xf32>
    %383 = arith.mulf %382, %18 : vector<2x384xf32>
    %384 = arith.addf %356, %383 : vector<2x384xf32>
    %c59 = arith.constant 59 : index
    %385 = memref.load %arg2[%c59] : memref<98xf32, #tpu.memory_space<smem>>
    %386 = vector.broadcast %385 : f32 to vector<2x384xf32>
    %387 = arith.mulf %386, %18 : vector<2x384xf32>
    %388 = arith.addf %360, %387 : vector<2x384xf32>
    %c66 = arith.constant 66 : index
    %389 = memref.load %arg2[%c66] : memref<98xf32, #tpu.memory_space<smem>>
    %390 = vector.broadcast %389 : f32 to vector<2x384xf32>
    %391 = arith.mulf %390, %18 : vector<2x384xf32>
    %392 = arith.addf %364, %391 : vector<2x384xf32>
    %c73 = arith.constant 73 : index
    %393 = memref.load %arg2[%c73] : memref<98xf32, #tpu.memory_space<smem>>
    %394 = vector.broadcast %393 : f32 to vector<2x384xf32>
    %395 = arith.mulf %394, %18 : vector<2x384xf32>
    %396 = arith.addf %368, %395 : vector<2x384xf32>
    %c80 = arith.constant 80 : index
    %397 = memref.load %arg2[%c80] : memref<98xf32, #tpu.memory_space<smem>>
    %398 = vector.broadcast %397 : f32 to vector<2x384xf32>
    %399 = arith.mulf %398, %18 : vector<2x384xf32>
    %400 = arith.addf %372, %399 : vector<2x384xf32>
    %c87 = arith.constant 87 : index
    %401 = memref.load %arg2[%c87] : memref<98xf32, #tpu.memory_space<smem>>
    %402 = vector.broadcast %401 : f32 to vector<2x384xf32>
    %403 = arith.mulf %402, %18 : vector<2x384xf32>
    %404 = arith.addf %376, %403 : vector<2x384xf32>
    %c94 = arith.constant 94 : index
    %405 = memref.load %arg2[%c94] : memref<98xf32, #tpu.memory_space<smem>>
    %406 = vector.broadcast %405 : f32 to vector<2x384xf32>
    %407 = arith.mulf %406, %18 : vector<2x384xf32>
    %408 = arith.addf %380, %407 : vector<2x384xf32>
    %c383_i32_38 = arith.constant 383 : i32
    %409 = tpu.dynamic_rotate %18 by %c383_i32_38 dim 1 : vector<2x384xf32>, i32 -> vector<2x384xf32>
    %c-1_i32_39 = arith.constant -1 : i32
    %410 = vector.broadcast %c-1_i32_39 : i32 to vector<2x384xi32>
    %411 = arith.cmpi sge, %35, %410 : vector<2x384xi32>
    %c15_i32_40 = arith.constant 15 : i32
    %412 = vector.broadcast %c15_i32_40 : i32 to vector<2x384xi32>
    %413 = arith.cmpi slt, %35, %412 : vector<2x384xi32>
    %414 = arith.andi %411, %413 : vector<2x384xi1>
    %cst_41 = arith.constant 0.000000e+00 : f32
    %415 = vector.broadcast %cst_41 : f32 to vector<2x384xf32>
    %416 = arith.select %414, %409, %415 : vector<2x384xi1>, vector<2x384xf32>
    %c53 = arith.constant 53 : index
    %417 = memref.load %arg2[%c53] : memref<98xf32, #tpu.memory_space<smem>>
    %418 = vector.broadcast %417 : f32 to vector<2x384xf32>
    %419 = arith.mulf %418, %416 : vector<2x384xf32>
    %420 = arith.addf %384, %419 : vector<2x384xf32>
    %c60 = arith.constant 60 : index
    %421 = memref.load %arg2[%c60] : memref<98xf32, #tpu.memory_space<smem>>
    %422 = vector.broadcast %421 : f32 to vector<2x384xf32>
    %423 = arith.mulf %422, %416 : vector<2x384xf32>
    %424 = arith.addf %388, %423 : vector<2x384xf32>
    %c67 = arith.constant 67 : index
    %425 = memref.load %arg2[%c67] : memref<98xf32, #tpu.memory_space<smem>>
    %426 = vector.broadcast %425 : f32 to vector<2x384xf32>
    %427 = arith.mulf %426, %416 : vector<2x384xf32>
    %428 = arith.addf %392, %427 : vector<2x384xf32>
    %c74 = arith.constant 74 : index
    %429 = memref.load %arg2[%c74] : memref<98xf32, #tpu.memory_space<smem>>
    %430 = vector.broadcast %429 : f32 to vector<2x384xf32>
    %431 = arith.mulf %430, %416 : vector<2x384xf32>
    %432 = arith.addf %396, %431 : vector<2x384xf32>
    %c81 = arith.constant 81 : index
    %433 = memref.load %arg2[%c81] : memref<98xf32, #tpu.memory_space<smem>>
    %434 = vector.broadcast %433 : f32 to vector<2x384xf32>
    %435 = arith.mulf %434, %416 : vector<2x384xf32>
    %436 = arith.addf %400, %435 : vector<2x384xf32>
    %c88 = arith.constant 88 : index
    %437 = memref.load %arg2[%c88] : memref<98xf32, #tpu.memory_space<smem>>
    %438 = vector.broadcast %437 : f32 to vector<2x384xf32>
    %439 = arith.mulf %438, %416 : vector<2x384xf32>
    %440 = arith.addf %404, %439 : vector<2x384xf32>
    %c95 = arith.constant 95 : index
    %441 = memref.load %arg2[%c95] : memref<98xf32, #tpu.memory_space<smem>>
    %442 = vector.broadcast %441 : f32 to vector<2x384xf32>
    %443 = arith.mulf %442, %416 : vector<2x384xf32>
    %444 = arith.addf %408, %443 : vector<2x384xf32>
    %c382_i32_42 = arith.constant 382 : i32
    %445 = tpu.dynamic_rotate %18 by %c382_i32_42 dim 1 : vector<2x384xf32>, i32 -> vector<2x384xf32>
    %c-2_i32_43 = arith.constant -2 : i32
    %446 = vector.broadcast %c-2_i32_43 : i32 to vector<2x384xi32>
    %447 = arith.cmpi sge, %35, %446 : vector<2x384xi32>
    %c14_i32_44 = arith.constant 14 : i32
    %448 = vector.broadcast %c14_i32_44 : i32 to vector<2x384xi32>
    %449 = arith.cmpi slt, %35, %448 : vector<2x384xi32>
    %450 = arith.andi %447, %449 : vector<2x384xi1>
    %cst_45 = arith.constant 0.000000e+00 : f32
    %451 = vector.broadcast %cst_45 : f32 to vector<2x384xf32>
    %452 = arith.select %450, %445, %451 : vector<2x384xi1>, vector<2x384xf32>
    %c54 = arith.constant 54 : index
    %453 = memref.load %arg2[%c54] : memref<98xf32, #tpu.memory_space<smem>>
    %454 = vector.broadcast %453 : f32 to vector<2x384xf32>
    %455 = arith.mulf %454, %452 : vector<2x384xf32>
    %456 = arith.addf %420, %455 : vector<2x384xf32>
    %c61 = arith.constant 61 : index
    %457 = memref.load %arg2[%c61] : memref<98xf32, #tpu.memory_space<smem>>
    %458 = vector.broadcast %457 : f32 to vector<2x384xf32>
    %459 = arith.mulf %458, %452 : vector<2x384xf32>
    %460 = arith.addf %424, %459 : vector<2x384xf32>
    %c68 = arith.constant 68 : index
    %461 = memref.load %arg2[%c68] : memref<98xf32, #tpu.memory_space<smem>>
    %462 = vector.broadcast %461 : f32 to vector<2x384xf32>
    %463 = arith.mulf %462, %452 : vector<2x384xf32>
    %464 = arith.addf %428, %463 : vector<2x384xf32>
    %c75 = arith.constant 75 : index
    %465 = memref.load %arg2[%c75] : memref<98xf32, #tpu.memory_space<smem>>
    %466 = vector.broadcast %465 : f32 to vector<2x384xf32>
    %467 = arith.mulf %466, %452 : vector<2x384xf32>
    %468 = arith.addf %432, %467 : vector<2x384xf32>
    %c82 = arith.constant 82 : index
    %469 = memref.load %arg2[%c82] : memref<98xf32, #tpu.memory_space<smem>>
    %470 = vector.broadcast %469 : f32 to vector<2x384xf32>
    %471 = arith.mulf %470, %452 : vector<2x384xf32>
    %472 = arith.addf %436, %471 : vector<2x384xf32>
    %c89 = arith.constant 89 : index
    %473 = memref.load %arg2[%c89] : memref<98xf32, #tpu.memory_space<smem>>
    %474 = vector.broadcast %473 : f32 to vector<2x384xf32>
    %475 = arith.mulf %474, %452 : vector<2x384xf32>
    %476 = arith.addf %440, %475 : vector<2x384xf32>
    %c96 = arith.constant 96 : index
    %477 = memref.load %arg2[%c96] : memref<98xf32, #tpu.memory_space<smem>>
    %478 = vector.broadcast %477 : f32 to vector<2x384xf32>
    %479 = arith.mulf %478, %452 : vector<2x384xf32>
    %480 = arith.addf %444, %479 : vector<2x384xf32>
    %c381_i32_46 = arith.constant 381 : i32
    %481 = tpu.dynamic_rotate %18 by %c381_i32_46 dim 1 : vector<2x384xf32>, i32 -> vector<2x384xf32>
    %c-3_i32_47 = arith.constant -3 : i32
    %482 = vector.broadcast %c-3_i32_47 : i32 to vector<2x384xi32>
    %483 = arith.cmpi sge, %35, %482 : vector<2x384xi32>
    %c13_i32_48 = arith.constant 13 : i32
    %484 = vector.broadcast %c13_i32_48 : i32 to vector<2x384xi32>
    %485 = arith.cmpi slt, %35, %484 : vector<2x384xi32>
    %486 = arith.andi %483, %485 : vector<2x384xi1>
    %cst_49 = arith.constant 0.000000e+00 : f32
    %487 = vector.broadcast %cst_49 : f32 to vector<2x384xf32>
    %488 = arith.select %486, %481, %487 : vector<2x384xi1>, vector<2x384xf32>
    %c55 = arith.constant 55 : index
    %489 = memref.load %arg2[%c55] : memref<98xf32, #tpu.memory_space<smem>>
    %490 = vector.broadcast %489 : f32 to vector<2x384xf32>
    %491 = arith.mulf %490, %488 : vector<2x384xf32>
    %492 = arith.addf %456, %491 : vector<2x384xf32>
    %c62 = arith.constant 62 : index
    %493 = memref.load %arg2[%c62] : memref<98xf32, #tpu.memory_space<smem>>
    %494 = vector.broadcast %493 : f32 to vector<2x384xf32>
    %495 = arith.mulf %494, %488 : vector<2x384xf32>
    %496 = arith.addf %460, %495 : vector<2x384xf32>
    %c69 = arith.constant 69 : index
    %497 = memref.load %arg2[%c69] : memref<98xf32, #tpu.memory_space<smem>>
    %498 = vector.broadcast %497 : f32 to vector<2x384xf32>
    %499 = arith.mulf %498, %488 : vector<2x384xf32>
    %500 = arith.addf %464, %499 : vector<2x384xf32>
    %c76 = arith.constant 76 : index
    %501 = memref.load %arg2[%c76] : memref<98xf32, #tpu.memory_space<smem>>
    %502 = vector.broadcast %501 : f32 to vector<2x384xf32>
    %503 = arith.mulf %502, %488 : vector<2x384xf32>
    %504 = arith.addf %468, %503 : vector<2x384xf32>
    %c83 = arith.constant 83 : index
    %505 = memref.load %arg2[%c83] : memref<98xf32, #tpu.memory_space<smem>>
    %506 = vector.broadcast %505 : f32 to vector<2x384xf32>
    %507 = arith.mulf %506, %488 : vector<2x384xf32>
    %508 = arith.addf %472, %507 : vector<2x384xf32>
    %c90 = arith.constant 90 : index
    %509 = memref.load %arg2[%c90] : memref<98xf32, #tpu.memory_space<smem>>
    %510 = vector.broadcast %509 : f32 to vector<2x384xf32>
    %511 = arith.mulf %510, %488 : vector<2x384xf32>
    %512 = arith.addf %476, %511 : vector<2x384xf32>
    %c97 = arith.constant 97 : index
    %513 = memref.load %arg2[%c97] : memref<98xf32, #tpu.memory_space<smem>>
    %514 = vector.broadcast %513 : f32 to vector<2x384xf32>
    %515 = arith.mulf %514, %488 : vector<2x384xf32>
    %516 = arith.addf %480, %515 : vector<2x384xf32>
    %c48_i32 = arith.constant 48 : i32
    %517 = tpu.dynamic_rotate %492 by %c48_i32 dim 1 : vector<2x384xf32>, i32 -> vector<2x384xf32>
    %c32_i32 = arith.constant 32 : i32
    %518 = tpu.dynamic_rotate %496 by %c32_i32 dim 1 : vector<2x384xf32>, i32 -> vector<2x384xf32>
    %c16_i32_50 = arith.constant 16 : i32
    %519 = tpu.dynamic_rotate %500 by %c16_i32_50 dim 1 : vector<2x384xf32>, i32 -> vector<2x384xf32>
    %c368_i32 = arith.constant 368 : i32
    %520 = tpu.dynamic_rotate %508 by %c368_i32 dim 1 : vector<2x384xf32>, i32 -> vector<2x384xf32>
    %c352_i32 = arith.constant 352 : i32
    %521 = tpu.dynamic_rotate %512 by %c352_i32 dim 1 : vector<2x384xf32>, i32 -> vector<2x384xf32>
    %c336_i32 = arith.constant 336 : i32
    %522 = tpu.dynamic_rotate %516 by %c336_i32 dim 1 : vector<2x384xf32>, i32 -> vector<2x384xf32>
    %523 = arith.addf %517, %518 : vector<2x384xf32>
    %524 = arith.addf %519, %504 : vector<2x384xf32>
    %525 = arith.addf %520, %521 : vector<2x384xf32>
    %526 = arith.addf %523, %524 : vector<2x384xf32>
    %527 = arith.addf %525, %522 : vector<2x384xf32>
    %528 = arith.addf %526, %527 : vector<2x384xf32>
    %529 = vector.extract_strided_slice %528 {offsets = [0, 0], sizes = [2, 256], strides = [1, 1]} : vector<2x384xf32> to vector<2x256xf32>
    %530 = arith.negf %529 : vector<2x256xf32>
    %531 = math.exp %530 : vector<2x256xf32>
    %cst_51 = arith.constant 1.000000e+00 : f32
    %532 = vector.broadcast %cst_51 : f32 to vector<2x256xf32>
    %533 = arith.addf %532, %531 : vector<2x256xf32>
    %534 = arith.divf %532, %533 : vector<2x256xf32>
    %c0_52 = arith.constant 0 : index
    %c0_53 = arith.constant 0 : index
    %c0_54 = arith.constant 0 : index
    %535 = vector.load %arg3[%c0_52, %c0_53, %c0_54] : memref<2x1x256xf32, #tpu.memory_space<vmem>>, vector<2x1x256xf32>
    %536 = vector.shape_cast %535 : vector<2x1x256xf32> to vector<2x256xf32>
    %537 = vector.shape_cast %534 : vector<2x256xf32> to vector<2x1x256xf32>
    tpu.vector_store %arg3[%c0_52, %c0_53, %c0_54], %537 {strides = array<i32>} : memref<2x1x256xf32, #tpu.memory_space<vmem>>, vector<2x1x256xf32>,
    return
  }
  func.func @transform_0(%arg0: i32) -> (i32, i32, i32) {
    %c0_i32 = arith.constant 0 : i32
    %c0_i32_0 = arith.constant 0 : i32
    %c0_i32_1 = arith.constant 0 : i32
    return %arg0, %c0_i32, %c0_i32_0 : i32, i32, i32
  }
  func.func @transform_1(%arg0: i32) -> i32 {
    %c0_i32 = arith.constant 0 : i32
    %c0_i32_0 = arith.constant 0 : i32
    return %c0_i32 : i32
  }
  func.func @transform_2(%arg0: i32) -> (i32, i32, i32) {
    %c0_i32 = arith.constant 0 : i32
    %c0_i32_0 = arith.constant 0 : i32
    %c0_i32_1 = arith.constant 0 : i32
    return %arg0, %c0_i32, %c0_i32_0 : i32, i32, i32
  }
}

</mosaic_0001>

<bundles_post_ra>
// kernel: tpu_custom_call.1
= control target key start
LH: loop header
LB: loop body
LE: loop exit
PB: predicated region body
PF: predicated region fallthrough
CT: control target
= control target key end

     0   :  { %s3100_s0 = inlined_call_operand.hbm [shape: f32[2,4,256], index: 0, kind: input, shape index: {}]   ;;  %s3101_s1 = inlined_call_operand.vmem [shape: f32[98], index: 1, kind: input, shape index: {}]   ;;  %s3102_s2 = inlined_call_operand.hbm [shape: f32[2,1,256], index: 2, kind: output, shape index: {}]  }
   0x1   :  { %3211 = sst [smem:[#allocation168_spill]] %s3102_s2 }
   0x2   :  { %7 = vsyncpa [#allocation3], 0 }
   0x3   :  { %8 = vsyncpa [#allocation5], 0 }
   0x4   :  { %9 = vsyncpa [#allocation4], 0  ;;  %s1403_s9 = smov [#allocation2]   ;;  %s28_s13 = sshll.u32 %s3101_s1, 4  ;;  %s29_s13 = int_to_ptr.vmem [resolvable:$true] %s28_s13 }
   0x5   :  { %s15_s10 = sshll.u32 %s1403_s9, 4  ;;  %s16_s10 = int_to_ptr.vmem [resolvable:$true] %s15_s10 }
   0x6   :  { %s1353_s14 = scalar_lea.vmem %s16_s10, 256  ;;  %p1358_p1 = scmp.lt.s32.totalorder %s16_s10, %s16_s10 }
   0x7   :  { %p1354_p0 = scmp.ne.s32.totalorder %s16_s10, %s1353_s14  ;;  %p1359_p2 = scmp.lt.s32.totalorder %s1353_s14, %s1353_s14 }
   0x9   :  { %p1360_p3 = por %p1359_p2, %p1358_p1 }
   0xb   :  { %p1361_p4 = pnand %p1360_p3, %p1354_p0 }
   0xd   :  { %1364 = shalt.err (!%p1361_p4)
}
   0xe   :  { %s1404_s15 = smov 128   ;;  %s1405_s16 = smov 8  }
   0xf   :  { %21 = dma.hbm_to_vmem [thread:$0]  %s3100_s0, 256, %s16_s10, [#allocation3], %s1404_s15, %s1404_s15, %s1405_s16  }
  0x10   :  { %s1365_s19 = scalar_lea.vmem %s29_s13, 16  ;;  %p1370_p6 = scmp.lt.s32.totalorder %s29_s13, %s29_s13 }
  0x11   :  { %p1366_p5 = scmp.ne.s32.totalorder %s29_s13, %s1365_s19  ;;  %p1371_p7 = scmp.lt.s32.totalorder %s1365_s19, %s1365_s19 }
  0x13   :  { %p1372_p8 = por %p1371_p7, %p1370_p6 }
  0x15   :  { %p1373_p9 = pnand %p1372_p8, %p1366_p5 }
  0x17   :  { %1376 = shalt.err (!%p1373_p9)
}
  0x18   :  { %s1406_s1 = smov [#allocation6]  }
  0x19   :  { %31 = dma.vmem_to_smem %s29_s13, 16, %s1406_s1, [#allocation5]  }
  0x1a   :  { %1397 = dma.done.wait [#allocation3], 256  }
  0x1b   :  { %1398 = vsyncadd [#allocation3], 4294967040 }
  0x1c   :  { %1399 = dma.done.wait [#allocation5], 16  }
  0x1d   :  { %1400 = vsyncadd [#allocation5], 4294967280 }
  0x1e   :  { %38 = sfence }
  0x1f   :  { %v39_v0 = vld [vmem:[#allocation2] ss:$4 sm:$0x3]  ;;  %v1407_v1 = vmov 0.0   ;;  %s1408_s20 = smov 3   ;;  %s1409_s0 = smov 1   ;;  %v3116_v3 = vlaneseq }
  0x20   :  { %166 = vrot.lane.b32.xlu1 %v1407_v1, %s1408_s20  ;;  %298 = vrot.lane.b32.xlu0 %v1407_v1, %s1409_s0  ;;  %v41_v2 = vld [vmem:[#allocation2 + $0x8] ss:$4 sm:$0x3]  ;;  %v43_v4 = vld [vmem:[#allocation2 + $0x1] ss:$4 sm:$0x3] }
  0x21   :  { %v45_v5 = vld [vmem:[#allocation2 + $0x9] ss:$4 sm:$0x3]  ;;  %v1410_v6 = vmov 1966171168   ;;  %v46_v8 = vadd.f32 %v43_v4, %v39_v0  ;;  %s3103_s21 = smov 2   ;;  %v48_v27 = vmax.f32 %v39_v0, %v43_v4 }
  0x22   :  { %v72_v7 = vunpack.c.l.s4 %v1410_v6  ;;  %v47_v9 = vadd.f32 %v45_v5, %v41_v2  ;;  %v51_v10 = vld [vmem:[#allocation2 + $0x2] ss:$4 sm:$0x3]  ;;  %v53_v11 = vld [vmem:[#allocation2 + $0xa] ss:$4 sm:$0x3]  ;;  %v49_v28 = vmax.f32 %v41_v2, %v45_v5 }
  0x23   :  { %v59_v12 = vld [vmem:[#allocation2 + $0x3] ss:$4 sm:$0x3]  ;;  %v61_v13 = vld [vmem:[#allocation2 + $0xb] ss:$4 sm:$0x3]  ;;  %v54_v14 = vadd.f32 %v51_v10, %v46_v8  ;;  %v56_v30 = vmax.f32 %v48_v27, %v51_v10 }
  0x24   :  { %222 = vrot.lane.b32.xlu1 %v1407_v1, %s3103_s21  ;;  %v55_v15 = vadd.f32 %v53_v11, %v47_v9  ;;  %v73_v16 = vunpack.c.0.s8 %v72_v7  ;;  %v75_v17 = vshrl.u32 %v3116_v3, 7  ;;  %s1412_s22 = smov 127   ;;  %v57_v31 = vmax.f32 %v49_v28, %v53_v11  ;;  %s1413_s23 = smov 126  }
  0x25   :  { %v62_v18 = vadd.f32 %v59_v12, %v54_v14  ;;  %v64_v32 = vmax.f32 %v56_v30, %v59_v12  ;;  %s1480_s24 = sld [smem:[#allocation6 + $0x16]]  ;;  %s3104_s26 = smov 125   ;;  %v1643_v39 = vand.u32 127, %v3116_v3 }
  0x26   :  { %v63_v19 = vadd.f32 %v61_v13, %v55_v15  ;;  %v1450_v22 = vsub.s32 %v73_v16, %v75_v17  ;;  %v65_v33 = vmax.f32 %v57_v31, %v61_v13  ;;  %s1482_s25 = sld [smem:[#allocation6 + $0x15]] }
  0x27   :  { %v66_v20 = vmul.f32 0.25, %v62_v18  ;;  %s1488_s27 = sld [smem:[#allocation6 + $0x17]]  ;;  %3255 = vst [vmem:[#allocation53_spill] sm:$0xff] %v1643_v39  ;;  %v124_v40 = vadd.s32 128, %v1643_v39  ;;  %v125_v41 = vadd.s32 256, %v1643_v39  ;;  %v1660_v42 = vand.u32 15, %v1643_v39 }
  0x28   :  { %v67_v21 = vmul.f32 0.25, %v63_v19  ;;  %3212 = vst [vmem:[#allocation11_spill] sm:$0xff] %v1450_v22  ;;  %v97_v34 = vcombine.low %v64_v32, %v65_v33  ;;  %s1490_s28 = sld [smem:[#allocation6 + $0x2]]  ;;  %vm224_vm0 = vcmp.lt.s32.totalorder %v1643_v39, 2  ;;  %vm168_vm1 = vcmp.lt.s32.totalorder %v1643_v39, 3 }
  0x29   :  { %s1492_s29 = sld [smem:[#allocation6 + $0x9]]  ;;  %v1663_v44 = vand.u32 15, %v124_v40  ;;  %v1669_v47 = vand.u32 15, %v125_v41  ;;  %vm228_vm2 = vcmp.ge.s32.totalorder %v1660_v42, 2  ;;  %vm172_vm3 = vcmp.ge.s32.totalorder %v1660_v42, 3 }
  0x2a   :  { %v70_v23 = vcombine.low %v66_v20, %v67_v21  ;;  %v104_v35 = vrot.slane %v97_v34, %v1450_v22  ;;  %s1494_s30 = sld [smem:[#allocation6 + $0x10]]  ;;  %vm300_vm4 = vcmp.lt.s32.totalorder %v1643_v39, 1  ;;  %vm3191_vm5 = vcmp.ge.s32.totalorder %v1660_v42, 1 }
  0x2b   :  { %3213 = sst [smem:[#allocation12_spill]] %s1480_s24  ;;  %vm3189_vm6 = vcmp.ge.s32.totalorder %v1663_v44, 1  ;;  %vm306_vm7 = vcmp.ge.s32.totalorder %v1669_v47, 1  ;;  %vm174_vm8 = vcmp.ge.s32.totalorder %v1669_v47, 3  ;;  %vm173_vm9 = vcmp.ge.s32.totalorder %v1663_v44, 3 }
  0x2c   :  { %v77_v24 = vrot.slane %v70_v23, %v1450_v22  ;;  %3214 = sst [smem:[#allocation13_spill]] %s1482_s25  ;;  %v105_v36 = vcombine.high %v104_v35, %v104_v35  ;;  %v1516_v38 = vrot.slane %v104_v35, %v1450_v22  ;;  %vm229_vm10 = vcmp.ge.s32.totalorder %v1663_v44, 2 }
  0x2d   :  { %3215 = sst [smem:[#allocation14_spill]] %s1488_s27  ;;  %vm230_vm11 = vcmp.ge.s32.totalorder %v1669_v47, 2  ;;  %vm3190_vm12 = vcmp.lt.s32.totalorder %v1660_v42, 15  ;;  %vm3192_vm13 = vcmp.lt.s32.totalorder %v1663_v44, 15  ;;  %vm506_vm14 = vcmp.lt.s32.totalorder %v1643_v39, 126 }
  0x2e   :  { %v1454_v25 = vrot.slane %v77_v24, %v1450_v22  ;;  %v78_v26 = vcombine.high %v77_v24, %v77_v24  ;;  %v1501_v37 = vrot.slane %v105_v36, %v1450_v22  ;;  %s1503_s3 = sld [smem:[#allocation6 + $0x1e]]  ;;  %3217 = vst [vmem:[#allocation16_spill] sm:$0xff] %v1516_v38  ;;  %v1672_v48 = vstv %s1490_s28 }
  0x2f   :  { %s1505_s4 = sld [smem:[#allocation6 + $0x25]]  ;;  %v1677_v49 = vstv %s1492_s29  ;;  %vm430_vm15 = vcmp.lt.s32.totalorder %v1643_v39, 127 }
  0x30   :  { %218 = vrot.lane.b32.xlu1 %v1454_v25, %s3103_s21  ;;  %162 = vrot.lane.b32.xlu0 %v1454_v25, %s1408_s20  ;;  %v1465_v29 = vrot.slane %v78_v26, %v1450_v22  ;;  %3216 = vst [vmem:[#allocation15_spill] sm:$0xff] %v1501_v37  ;;  %s1507_s5 = sld [smem:[#allocation6 + $0x2c]]  ;;  %v1680_v50 = vstv %s1494_s30 }
  0x31   :  { %s1509_s6 = sld [smem:[#allocation6]] }
  0x32   :  { %s1518_s7 = sld [smem:[#allocation6 + $0x7]] }
  0x33   :  { %s1520_s8 = sld [smem:[#allocation6 + $0xe]] }
  0x34   :  { %424 = vrot.lane.b32.xlu1 %v1454_v25, %s1412_s22  ;;  %294 = vrot.lane.b32.xlu0 %v1454_v25, %s1409_s0  ;;  %s1522_s9 = sld [smem:[#allocation6 + $0x1c]]  ;;  %v1683_v51 = vstv %s1503_s3 }
  0x35   :  { %s1524_s10 = sld [smem:[#allocation6 + $0x23]]  ;;  %v1686_v52 = vstv %s1505_s4 }
  0x36   :  { %s1530_s11 = sld [smem:[#allocation6 + $0x2a]]  ;;  %v1691_v53 = vstv %s1507_s5 }
  0x37   :  { %s1532_s12 = sld [smem:[#allocation6 + $0x1]]  ;;  %v1694_v54 = vstv %s1509_s6 }
  0x38   :  { %296 = vrot.lane.b32.xlu1 %v1465_v29, %s1409_s0  ;;  %164 = vrot.lane.b32.xlu0 %v1465_v29, %s1408_s20  ;;  %s1534_s13 = sld [smem:[#allocation6 + $0x8]]  ;;  %v1697_v55 = vstv %s1518_s7 }
  0x39   :  { %s1536_s14 = sld [smem:[#allocation6 + $0xf]]  ;;  %v1700_v56 = vstv %s1520_s8 }
  0x3a   :  { %s1542_s15 = sld [smem:[#allocation6 + $0x1d]]  ;;  %v1705_v57 = vstv %s1522_s9 }
  0x3b   :  { %s1544_s16 = sld [smem:[#allocation6 + $0x24]]  ;;  %v1708_v58 = vstv %s1524_s10 }
  0x3c   :  { %428 = vrot.lane.b32.xlu1 %v1407_v1, %s1412_s22  ;;  %220 = vrot.lane.b32.xlu0 %v1465_v29, %s3103_s21  ;;  %s1546_s17 = sld [smem:[#allocation6 + $0x2b]]  ;;  %v1711_v59 = vstv %s1530_s11 }
  0x3d   :  { %s1548_s18 = sld [smem:[#allocation6 + $0x3]]  ;;  %v1714_v60 = vstv %s1532_s12 }
  0x3e   :  { %3218 = sst [smem:[#allocation17_spill]] %s1534_s13 }
  0x3f   :  { %3219 = sst [smem:[#allocation18_spill]] %s1536_s14 }
  0x40   :  { %502 = vrot.lane.b32.xlu1 %v1465_v29, %s1413_s23  ;;  %426 = vrot.lane.b32.xlu0 %v1465_v29, %s1412_s22  ;;  %3220 = sst [smem:[#allocation19_spill]] %s1542_s15 }
  0x41   :  { %3221 = sst [smem:[#allocation20_spill]] %s1544_s16  ;;  %s3228_s16 = smov 125  }
  0x42   :  { %3222 = sst [smem:[#allocation21_spill]] %s1546_s17 }
  0x43   :  { %s1554_s19 = sld [smem:[#allocation6 + $0xa]]  ;;  %v1719_v61 = vstv %s1548_s18 }
  0x44   :  { %576 = vrot.lane.b32.xlu1 %v1454_v25, %s3104_s26  ;;  %500 = vrot.lane.b32.xlu0 %v1454_v25, %s1413_s23  ;;  %s1556_s1 = sld [smem:[#allocation6 + $0x11]]  ;;  %v1760_v10 = vmul.f32 %v1719_v61, %v1454_v25  ;;  %v1781_v15 = vmul.f32 %v1719_v61, %v1465_v29 }
  0x45   :  { %s1568_s2 = sld [smem:[#allocation6 + $0x2d]] }
  0x46   :  { %s1570_s17 = sld [smem:[#allocation6 + $0x4]]  ;;  %3279 = vst [vmem:[#allocation60_spill] sm:$0xff] %v1781_v15 }
  0x47   :  { %s1580_s15 = sld [smem:[#allocation6 + $0x19]] }
  0x48   :  { %580 = vrot.lane.b32.xlu1 %v1407_v1, %s3104_s26  ;;  %504 = vrot.lane.b32.xlu0 %v1407_v1, %s1413_s23  ;;  %s1582_s14 = sld [smem:[#allocation6 + $0x20]] }
  0x49   :  { %s1606_s13 = sld [smem:[#allocation6 + $0x31]]  ;;  %v1722_v62 = vstv %s1554_s19 }
  0x4a   :  { %s1688_s27 = sld [smem:[#allocation6 + $0x3b]]  ;;  %v1725_v63 = vstv %s1556_s1  ;;  %v1764_v11 = vmul.f32 %v1722_v62, %v1454_v25  ;;  %v1785_v16 = vmul.f32 %v1722_v62, %v1465_v29 }
  0x4b   :  { %3225 = sst [smem:[#allocation24_spill]] %s1568_s2  ;;  %v1768_v12 = vmul.f32 %v1725_v63, %v1454_v25  ;;  %v1789_v17 = vmul.f32 %v1725_v63, %v1465_v29 }
  0x4c   :  { %654 = vrot.lane.b32.xlu1 %v1501_v37, %s1408_s20  ;;  %578 = vrot.lane.b32.xlu0 %v1465_v29, %s3104_s26  ;;  %s1566_s26 = sld [smem:[#allocation6 + $0x26]]  ;;  %3281 = vst [vmem:[#allocation61_spill] sm:$0xff] %v1785_v16 }
  0x4d   :  { %3226 = sst [smem:[#allocation25_spill]] %s1570_s17  ;;  %3273 = vst [vmem:[#allocation57_spill] sm:$0xff] %v1768_v12  ;;  %3283 = vst [vmem:[#allocation62_spill] sm:$0xff] %v1789_v17 }
  0x4e   :  { %3230 = sst [smem:[#allocation28_spill]] %s1580_s15 }
  0x4f   :  { %3231 = sst [smem:[#allocation29_spill]] %s1582_s14 }
  0x50   :  { %718 = vrot.lane.b32.xlu1 %v1501_v37, %s3103_s21  ;;  %652 = vrot.lane.b32.xlu0 %v1516_v38, %s1408_s20  ;;  %s1558_s20 = sld [smem:[#allocation6 + $0x18]] }
  0x51   :  { %s1588_s17 = sld [smem:[#allocation6 + $0x2e]] }
  0x52   :  { %3224 = sst [smem:[#allocation23_spill]] %s1566_s26 }
  0x53   :  { %s1592_s2 = sld [smem:[#allocation6 + $0xc]] }
  0x54   :  { %782 = vrot.lane.b32.xlu1 %v1501_v37, %s1409_s0  ;;  %716 = vrot.lane.b32.xlu0 %v1516_v38, %s3103_s21  ;;  %s1560_s21 = sld [smem:[#allocation6 + $0x1f]] }
  0x55   :  { %s1594_s26 = sld [smem:[#allocation6 + $0x13]] }
  0x56   :  { %s1600_s15 = sld [smem:[#allocation6 + $0x28]]  ;;  %v395_v0 = vstv %s1558_s20 }
  0x57   :  { %3233 = sst [smem:[#allocation31_spill]] %s1588_s17  ;;  %v1771_v13 = vmul.f32 %v395_v0, %v1454_v25  ;;  %v1802_v20 = vmul.f32 %v395_v0, %v1465_v29 }
  0x58   :  { %900 = vrot.lane.b32.xlu1 %v1501_v37, %s1412_s22  ;;  %780 = vrot.lane.b32.xlu0 %v1516_v38, %s1409_s0  ;;  %s1572_s0 = sld [smem:[#allocation6 + $0xb]] }
  0x59   :  { %3235 = sst [smem:[#allocation33_spill]] %s1592_s2  ;;  %3274 = vst [vmem:[#allocation58_spill] sm:$0xff] %v1771_v13  ;;  %3290 = vst [vmem:[#allocation65_spill] sm:$0xff] %v1802_v20 }
  0x5a   :  { %3223 = sst [smem:[#allocation22_spill]] %s1560_s21 }
  0x5b   :  { %s1578_s21 = sld [smem:[#allocation6 + $0x12]] }
  0x5c   :  { %964 = vrot.lane.b32.xlu1 %v1501_v37, %s1413_s23  ;;  %898 = vrot.lane.b32.xlu0 %v1516_v38, %s1412_s22  ;;  %s1584_s22 = sld [smem:[#allocation6 + $0x27]] }
  0x5d   :  { %3236 = sst [smem:[#allocation34_spill]] %s1594_s26 }
  0x5e   :  { %3227 = sst [smem:[#allocation26_spill]] %s1572_s0 }
  0x5f   :  { %s1590_s0 = sld [smem:[#allocation6 + $0x5]] }
  0x60   :  { %1028 = vrot.lane.b32.xlu1 %v1501_v37, %s3228_s16  ;;  %962 = vrot.lane.b32.xlu0 %v1516_v38, %s1413_s23  ;;  %s1596_s23 = sld [smem:[#allocation6 + $0x1a]] }
  0x61   :  { %3229 = sst [smem:[#allocation27_spill]] %s1578_s21 }
  0x62   :  { %3232 = sst [smem:[#allocation30_spill]] %s1584_s22 }
  0x63   :  { %s1598_s21 = sld [smem:[#allocation6 + $0x21]] }
  0x64   :  { %1026 = vrot.lane.b32.xlu0 %v1516_v38, %s3228_s16  ;;  %3239 = sst [smem:[#allocation37_spill]] %s1600_s15 }
  0x65   :  { %3234 = sst [smem:[#allocation32_spill]] %s1590_s0 }
  0x66   :  { %3237 = sst [smem:[#allocation35_spill]] %s1596_s23 }
  0x67   :  { %s1602_s14 = sld [smem:[#allocation6 + $0x2f]] }
  0x68   :  { %s1604_s22 = sld [smem:[#allocation6 + $0x6]] }
  0x69   :  { %3238 = sst [smem:[#allocation36_spill]] %s1598_s21 }
  0x6a   :  { %3242 = sst [smem:[#allocation40_spill]] %s1606_s13 }
  0x6b   :  { %s1608_s16 = sld [smem:[#allocation6 + $0x38]] }
  0x6c   :  { %s1610_s17 = sld [smem:[#allocation6 + $0x3f]] }
  0x6d   :  { %3240 = sst [smem:[#allocation38_spill]] %s1602_s14 }
  0x6e   :  { %3241 = sst [smem:[#allocation39_spill]] %s1604_s22 }
  0x6f   :  { %s1612_s0 = sld [smem:[#allocation6 + $0x4d]] }
  0x70   :  { %s1614_s2 = sld [smem:[#allocation6 + $0x54]] }
  0x71   :  { %3243 = sst [smem:[#allocation41_spill]] %s1608_s16 }
  0x72   :  { %s1616_s26 = sld [smem:[#allocation6 + $0x5b]]  ;;  %v1871_v28 = vstv %s1610_s17 }
  0x73   :  { %s1618_s23 = sld [smem:[#allocation6 + $0xd]]  ;;  %3325 = vst [vmem:[#allocation83_spill] sm:$0xff] %v1871_v28 }
  0x74   :  { %s1620_s21 = sld [smem:[#allocation6 + $0x14]] }
  0x75   :  { %3244 = sst [smem:[#allocation42_spill]] %s1612_s0 }
  0x76   :  { %3245 = sst [smem:[#allocation43_spill]] %s1614_s2 }
  0x77   :  { %s1622_s15 = sld [smem:[#allocation6 + $0x1b]] }
  0x78   :  { %3246 = sst [smem:[#allocation44_spill]] %s1616_s26 }
  0x79   :  { %3247 = sst [smem:[#allocation45_spill]] %s1618_s23 }
  0x7a   :  { %s1624_s14 = sld [smem:[#allocation6 + $0x22]]  ;;  %v1895_v28 = vstv %s1620_s21 }
  0x7b   :  { %s1626_s22 = sld [smem:[#allocation6 + $0x29]]  ;;  %3335 = vst [vmem:[#allocation90_spill] sm:$0xff] %v1895_v28 }
  0x7c   :  { %s1628_s13 = sld [smem:[#allocation6 + $0x30]] }
  0x7d   :  { %3248 = sst [smem:[#allocation46_spill]] %s1622_s15 }
  0x7e   :  { %s1630_s16 = sld [smem:[#allocation6 + $0x32]] }
  0x7f   :  { %s1632_s0 = sld [smem:[#allocation6 + $0x39]] }
  0x80   :  { %s1634_s2 = sld [smem:[#allocation6 + $0x40]] }
  0x81   :  { %s1636_s26 = sld [smem:[#allocation6 + $0x4e]] }
  0x82   :  { %3249 = sst [smem:[#allocation47_spill]] %s1628_s13 }
  0x83   :  { %s1638_s23 = sld [smem:[#allocation6 + $0x55]] }
  0x84   :  { %3250 = sst [smem:[#allocation48_spill]] %s1630_s16 }
  0x85   :  { %s1640_s15 = sld [smem:[#allocation6 + $0x5c]] }
  0x86   :  { %3251 = sst [smem:[#allocation49_spill]] %s1634_s2 }
  0x87   :  { %3252 = sst [smem:[#allocation50_spill]] %s1636_s26 }
  0x88   :  { %s1645_s13 = sld [smem:[#allocation6 + $0x46]] }
  0x89   :  { %3253 = sst [smem:[#allocation51_spill]] %s1638_s23 }
  0x8a   :  { %s1647_s16 = sld [smem:[#allocation6 + $0x33]] }
  0x8b   :  { %3254 = sst [smem:[#allocation52_spill]] %s1640_s15 }
  0x8c   :  { %s1650_s2 = sld [smem:[#allocation6 + $0x3a]] }
  0x8d   :  { %s1653_s23 = sld [smem:[#allocation6 + $0x41]] }
  0x8e   :  { %s1655_s15 = sld [smem:[#allocation6 + $0x4f]] }
  0x8f   :  { %s1657_s26 = sld [smem:[#allocation6 + $0x56]] }
  0x90   :  { %s3259_s25 = sld [smem:[#allocation17_spill]] }
  0x91   :  { %s3260_s28 = sld [smem:[#allocation18_spill]] }
  0x92   :  { %3256 = sst [smem:[#allocation54_spill]] %s1650_s2 }
  0x93   :  { %s1665_s2 = sld [smem:[#allocation6 + $0x5d]] }
  0x94   :  { %s3261_s24 = sld [smem:[#allocation19_spill]] }
  0x95   :  { %3257 = sst [smem:[#allocation55_spill]] %s1657_s26 }
  0x96   :  { %s1674_s26 = sld [smem:[#allocation6 + $0x47]]  ;;  %v1731_v1 = vstv %s3259_s25 }
  0x97   :  { %s3262_s29 = sld [smem:[#allocation22_spill]]  ;;  %v1734_v2 = vstv %s3260_s28 }
  0x98   :  { %s1702_s30 = sld [smem:[#allocation6 + $0x3c]] }
  0x99   :  { %s3263_s3 = sld [smem:[#allocation20_spill]] }
  0x9a   :  { %s3264_s4 = sld [smem:[#allocation21_spill]]  ;;  %v1737_v4 = vstv %s3261_s24 }
  0x9b   :  { %s3266_s5 = sld [smem:[#allocation24_spill]] }
  0x9c   :  { %3258 = sst [smem:[#allocation56_spill]] %s1674_s26 }
  0x9d   :  { %s3265_s26 = sld [smem:[#allocation23_spill]]  ;;  %v1740_v5 = vstv %s3262_s29 }
  0x9e   :  { %s1716_s6 = sld [smem:[#allocation6 + $0x3d]]  ;;  %v1777_v14 = vmul.f32 %v1740_v5, %v1454_v25  ;;  %v1806_v21 = vmul.f32 %v1740_v5, %v1465_v29 }
  0x9f   :  { %s1728_s7 = sld [smem:[#allocation6 + $0x34]]  ;;  %v1745_v6 = vstv %s3263_s3 }
  0xa0   :  { %s1742_s8 = sld [smem:[#allocation6 + $0x3e]]  ;;  %v1748_v7 = vstv %s3264_s4  ;;  %3277 = vst [vmem:[#allocation59_spill] sm:$0xff] %v1777_v14  ;;  %3292 = vst [vmem:[#allocation66_spill] sm:$0xff] %v1806_v21 }
  0xa1   :  { %v1754_v9 = vstv %s3266_s5  ;;  %s1756_s9 = sld [smem:[#allocation6 + $0x35]] }
  0xa2   :  { %s3271_s25 = sld [smem:[#allocation25_spill]]  ;;  %v1799_v19 = vmul.f32 %v1754_v9, %v1454_v25  ;;  %v1822_v26 = vmul.f32 %v1754_v9, %v1465_v29 }
  0xa3   :  { %v1751_v8 = vstv %s3265_s26  ;;  %s3272_s24 = sld [smem:[#allocation26_spill]] }
  0xa4   :  { %3267 = sst [smem:[#allocation17_spill]] %s1716_s6  ;;  %v1795_v18 = vmul.f32 %v1751_v8, %v1454_v25  ;;  %3288 = vst [vmem:[#allocation64_spill] sm:$0xff] %v1799_v19  ;;  %v1818_v25 = vmul.f32 %v1751_v8, %v1465_v29  ;;  %3301 = vst [vmem:[#allocation70_spill] sm:$0xff] %v1822_v26 }
  0xa5   :  { %3268 = sst [smem:[#allocation18_spill]] %s1728_s7 }
  0xa6   :  { %3269 = sst [smem:[#allocation19_spill]] %s1742_s8  ;;  %3286 = vst [vmem:[#allocation63_spill] sm:$0xff] %v1795_v18  ;;  %3299 = vst [vmem:[#allocation69_spill] sm:$0xff] %v1818_v25 }
  0xa7   :  { %3270 = sst [smem:[#allocation22_spill]] %s1756_s9 }
  0xa8   :  { %s1773_s26 = sld [smem:[#allocation6 + $0x50]]  ;;  %v1811_v23 = vstv %s3271_s25 }
  0xa9   :  { %s3276_s10 = sld [smem:[#allocation27_spill]]  ;;  %3295 = vst [vmem:[#allocation67_spill] sm:$0xff] %v1811_v23  ;;  %v1814_v24 = vstv %s3272_s24 }
  0xaa   :  { %s3280_s12 = sld [smem:[#allocation29_spill]]  ;;  %3297 = vst [vmem:[#allocation68_spill] sm:$0xff] %v1814_v24 }
  0xab   :  { %s3282_s18 = sld [smem:[#allocation30_spill]] }
  0xac   :  { %s1791_s19 = sld [smem:[#allocation6 + $0x51]] }
  0xad   :  { %s3285_s1 = sld [smem:[#allocation31_spill]] }
  0xae   :  { %3275 = sst [smem:[#allocation20_spill]] %s1773_s26 }
  0xaf   :  { %s3287_s20 = sld [smem:[#allocation32_spill]]  ;;  %v1827_v27 = vstv %s3276_s10 }
  0xb0   :  { %s3289_s28 = sld [smem:[#allocation33_spill]]  ;;  %3304 = vst [vmem:[#allocation71_spill] sm:$0xff] %v1827_v27  ;;  %v1831_v30 = vstv %s3280_s12 }
  0xb1   :  { %s3291_s29 = sld [smem:[#allocation34_spill]]  ;;  %3306 = vst [vmem:[#allocation72_spill] sm:$0xff] %v1831_v30  ;;  %v1834_v31 = vstv %s3282_s18 }
  0xb2   :  { %3284 = sst [smem:[#allocation21_spill]] %s1791_s19  ;;  %3308 = vst [vmem:[#allocation73_spill] sm:$0xff] %v1834_v31 }
  0xb3   :  { %s1808_s3 = sld [smem:[#allocation6 + $0x36]]  ;;  %v1839_v32 = vstv %s3285_s1 }
  0xb4   :  { %s3294_s4 = sld [smem:[#allocation35_spill]]  ;;  %3310 = vst [vmem:[#allocation74_spill] sm:$0xff] %v1839_v32 }
  0xb5   :  { %s3296_s5 = sld [smem:[#allocation36_spill]]  ;;  %v1842_v29 = vstv %s3287_s20 }
  0xb6   :  { %s3298_s19 = sld [smem:[#allocation37_spill]]  ;;  %3312 = vst [vmem:[#allocation75_spill] sm:$0xff] %v1842_v29  ;;  %v1845_v33 = vstv %s3289_s28 }
  0xb7   :  { %s3300_s9 = sld [smem:[#allocation38_spill]]  ;;  %3314 = vst [vmem:[#allocation76_spill] sm:$0xff] %v1845_v33  ;;  %v1848_v34 = vstv %s3291_s29 }
  0xb8   :  { %s1824_s26 = sld [smem:[#allocation6 + $0x37]]  ;;  %3316 = vst [vmem:[#allocation77_spill] sm:$0xff] %v1848_v34 }
  0xb9   :  { %3293 = sst [smem:[#allocation23_spill]] %s1808_s3 }
  0xba   :  { %s3303_s7 = sld [smem:[#allocation40_spill]] }
  0xbb   :  { %s3305_s25 = sld [smem:[#allocation41_spill]]  ;;  %v1854_v36 = vstv %s3296_s5 }
  0xbc   :  { %s3307_s24 = sld [smem:[#allocation39_spill]]  ;;  %3317 = vst [vmem:[#allocation78_spill] sm:$0xff] %v1854_v36  ;;  %v1857_v40 = vstv %s3298_s19 }
  0xbd   :  { %s1836_s3 = sld [smem:[#allocation6 + $0x52]]  ;;  %3319 = vst [vmem:[#allocation79_spill] sm:$0xff] %v1857_v40  ;;  %v1860_v41 = vstv %s3300_s9 }
  0xbe   :  { %3302 = sst [smem:[#allocation24_spill]] %s1824_s26  ;;  %3320 = vst [vmem:[#allocation80_spill] sm:$0xff] %v1860_v41  ;;  %v1902_v41 = vstv %s1626_s22 }
  0xbf   :  { %s3309_s8 = sld [smem:[#allocation42_spill]]  ;;  %3337 = vst [vmem:[#allocation92_spill] sm:$0xff] %v1902_v41 }
  0xc0   :  { %s3311_s6 = sld [smem:[#allocation43_spill]]  ;;  %v1865_v0 = vstv %s3303_s7 }
  0xc1   :  { %s3313_s26 = sld [smem:[#allocation44_spill]]  ;;  %3321 = vst [vmem:[#allocation81_spill] sm:$0xff] %v1865_v0  ;;  %v1868_v3 = vstv %s3305_s25  ;;  %v1899_v0 = vstv %s1624_s14 }
  0xc2   :  { %s3315_s10 = sld [smem:[#allocation45_spill]]  ;;  %3323 = vst [vmem:[#allocation82_spill] sm:$0xff] %v1868_v3  ;;  %v1874_v35 = vstv %s3307_s24  ;;  %v1892_v3 = vpop.permute.xlu1 %166  ;;  %3336 = vst [vmem:[#allocation91_spill] sm:$0xff] %v1899_v0 }
  0xc3   :  { %s1850_s11 = sld [smem:[#allocation6 + $0x53]]  ;;  %3326 = vst [vmem:[#allocation84_spill] sm:$0xff] %v1874_v35  ;;  %3334 = vst [vmem:[#allocation89_spill] sm:$0xff] %v1892_v3 }
  0xc4   :  { %s3318_s12 = sld [smem:[#allocation46_spill]] }
  0xc5   :  { %s1862_s18 = sld [smem:[#allocation6 + $0x42]]  ;;  %v1879_v46 = vstv %s3309_s8 }
  0xc6   :  { %s3322_s1 = sld [smem:[#allocation47_spill]]  ;;  %3327 = vst [vmem:[#allocation85_spill] sm:$0xff] %v1879_v46  ;;  %v1882_v45 = vstv %s3311_s6  ;;  %v1916_v46 = vmul.f32 0.0, %v1719_v61 }
  0xc7   :  { %s3324_s20 = sld [smem:[#allocation48_spill]]  ;;  %3328 = vst [vmem:[#allocation86_spill] sm:$0xff] %v1882_v45  ;;  %v1885_v43 = vstv %s3313_s26  ;;  %v1913_v45 = vstv %s1632_s0 }
  0xc8   :  { %s1876_s28 = sld [smem:[#allocation6 + $0x43]]  ;;  %3329 = vst [vmem:[#allocation87_spill] sm:$0xff] %v1885_v43  ;;  %v1888_v22 = vstv %s3315_s10  ;;  %3341 = vst [vmem:[#allocation95_spill] sm:$0xff] %v1913_v45  ;;  %v1932_v45 = vmul.f32 0.0, %v1722_v62 }
  0xc9   :  { %s3330_s9 = sld [smem:[#allocation49_spill]]  ;;  %3331 = vst [vmem:[#allocation88_spill] sm:$0xff] %v1888_v22  ;;  %3342 = vst [vmem:[#allocation96_spill] sm:$0xff] %v1916_v46  ;;  %v1960_v46 = vmul.f32 0.0, %v1754_v9  ;;  %v1978_v9 = vpop.permute.xlu1 %222  ;;  %v2029_v0 = vstv %s1850_s11 }
  0xca   :  { %s3332_s7 = sld [smem:[#allocation50_spill]]  ;;  %3347 = vst [vmem:[#allocation100_spill] sm:$0xff] %v1932_v45  ;;  %v1954_v45 = vmul.f32 0.0, %v1740_v5  ;;  %v853_v5 = vstv %s1688_s27  ;;  %3366 = vst [vmem:[#allocation112_spill] sm:$0xff] %v1978_v9 }
  0xcb   :  { %s1890_s19 = sld [smem:[#allocation6 + $0x44]]  ;;  %3356 = vst [vmem:[#allocation107_spill] sm:$0xff] %v1960_v46  ;;  %v1982_v46 = vstv %s1665_s2  ;;  %3382 = vst [vmem:[#allocation125_spill] sm:$0xff] %v2029_v0 }
  0xcc   :  { %s3333_s29 = sld [smem:[#allocation51_spill]]  ;;  %v1907_v43 = vstv %s3322_s1  ;;  %3354 = vst [vmem:[#allocation105_spill] sm:$0xff] %v1954_v45  ;;  %3368 = vst [vmem:[#allocation113_spill] sm:$0xff] %v1982_v46  ;;  %v1986_v45 = vmul.f32 %v853_v5, %v1516_v38 }
  0xcd   :  { %s3338_s17 = sld [smem:[#allocation52_spill]]  ;;  %3339 = vst [vmem:[#allocation93_spill] sm:$0xff] %v1907_v43  ;;  %v1910_v22 = vstv %s3324_s20 }
  0xce   :  { %s1904_s6 = sld [smem:[#allocation6 + $0x45]]  ;;  %3340 = vst [vmem:[#allocation94_spill] sm:$0xff] %v1910_v22  ;;  %3371 = vst [vmem:[#allocation114_spill] sm:$0xff] %v1986_v45  ;;  %v2025_v22 = vstv %s1836_s3  ;;  %v2035_v28 = vstv %s1876_s28 }
  0xcf   :  { %s3343_s21 = sld [smem:[#allocation54_spill]]  ;;  %v1923_v35 = vstv %s3330_s9  ;;  %3381 = vst [vmem:[#allocation124_spill] sm:$0xff] %v2025_v22  ;;  %3384 = vst [vmem:[#allocation127_spill] sm:$0xff] %v2035_v28 }
  0xd0   :  { %s1918_s8 = sld [smem:[#allocation6 + $0x5e]]  ;;  %3344 = vst [vmem:[#allocation97_spill] sm:$0xff] %v1923_v35  ;;  %v1926_v41 = vstv %s3332_s7  ;;  %v1943_v35 = vstv %s1647_s16  ;;  %s1418_s7 = smov 16  }
  0xd1   :  { %3345 = vst [vmem:[#allocation98_spill] sm:$0xff] %v1926_v41  ;;  %s3348_s14 = sld [smem:[#allocation55_spill]]  ;;  %3350 = vst [vmem:[#allocation102_spill] sm:$0xff] %v1943_v35  ;;  %v1957_v41 = vmul.f32 0.0, %v1751_v8  ;;  %v1976_v8 = vpop.permute.xlu0 %298 }
  0xd2   :  { %v1929_v43 = vstv %s3333_s29  ;;  %s1934_s0 = sld [smem:[#allocation6 + $0x5f]]  ;;  %3365 = vst [vmem:[#allocation111_spill] sm:$0xff] %v1976_v8  ;;  %s1420_s29 = smov 96  }
  0xd3   :  { %3346 = vst [vmem:[#allocation99_spill] sm:$0xff] %v1929_v43  ;;  %v1939_v61 = vstv %s3338_s17  ;;  %v1946_v43 = vmul.f32 0.0, %v1725_v63  ;;  %s3352_s22 = sld [smem:[#allocation56_spill]]  ;;  %3355 = vst [vmem:[#allocation106_spill] sm:$0xff] %v1957_v41  ;;  %v1965_v63 = vstv %s1653_s23 }
  0xd4   :  { %3349 = vst [vmem:[#allocation101_spill] sm:$0xff] %v1939_v61  ;;  %s1948_s26 = sld [smem:[#allocation6 + $0x60]]  ;;  %3359 = vst [vmem:[#allocation108_spill] sm:$0xff] %v1965_v63 }
  0xd5   :  { %3351 = vst [vmem:[#allocation103_spill] sm:$0xff] %v1946_v43  ;;  %v1951_v62 = vstv %s3343_s21  ;;  %s3357_s16 = sld [smem:[#allocation17_spill]]  ;;  %v1968_v43 = vstv %s1655_s15 }
  0xd6   :  { %3353 = vst [vmem:[#allocation104_spill] sm:$0xff] %v1951_v62  ;;  %s1962_s5 = sld [smem:[#allocation6 + $0x61]]  ;;  %3361 = vst [vmem:[#allocation109_spill] sm:$0xff] %v1968_v43  ;;  %v2048_v22 = vstv %s1918_s8 }
  0xd7   :  { %s3358_s25 = sld [smem:[#allocation19_spill]]  ;;  %v1971_v62 = vstv %s3348_s14  ;;  %3388 = vst [vmem:[#allocation131_spill] sm:$0xff] %v2048_v22  ;;  %v2057_v28 = vmul.f32 %v2048_v22, %v1516_v38 }
  0xd8   :  { %s3360_s24 = sld [smem:[#allocation18_spill]]  ;;  %3363 = vst [vmem:[#allocation110_spill] sm:$0xff] %v1971_v62  ;;  %v1989_v62 = vstv %s1702_s30 }
  0xd9   :  { %s3362_s10 = sld [smem:[#allocation20_spill]]  ;;  %3372 = vst [vmem:[#allocation115_spill] sm:$0xff] %v1989_v62  ;;  %3392 = vst [vmem:[#allocation133_spill] sm:$0xff] %v2057_v28  ;;  %v2079_v28 = vmul.f32 %v853_v5, %v1501_v37 }
  0xda   :  { %s1974_s1 = sld [smem:[#allocation6 + $0x57]] }
  0xdb   :  { %s3364_s20 = sld [smem:[#allocation22_spill]]  ;;  %v1995_v43 = vstv %s3357_s16  ;;  %3397 = vst [vmem:[#allocation138_spill] sm:$0xff] %v2079_v28 }
  0xdc   :  { %s3367_s9 = sld [smem:[#allocation21_spill]]  ;;  %3373 = vst [vmem:[#allocation116_spill] sm:$0xff] %v1995_v43  ;;  %v2076_v22 = vstv %s1962_s5 }
  0xdd   :  { %s3369_s23 = sld [smem:[#allocation23_spill]]  ;;  %v1998_v63 = vstv %s3358_s25  ;;  %3396 = vst [vmem:[#allocation137_spill] sm:$0xff] %v2076_v22 }
  0xde   :  { %s3370_s15 = sld [smem:[#allocation24_spill]]  ;;  %3374 = vst [vmem:[#allocation117_spill] sm:$0xff] %v1998_v63  ;;  %v845_v46 = vstv %s3360_s24 }
  0xdf   :  { %s1991_s27 = sld [smem:[#allocation6 + $0x58]]  ;;  %v875_v41 = vstv %s3362_s10  ;;  %v2005_v45 = vmul.f32 %v845_v46, %v1516_v38  ;;  %v2051_v0 = vmul.f32 %v845_v46, %v1501_v37 }
  0xe0   :  { %s2002_s2 = sld [smem:[#allocation6 + $0x59]]  ;;  %v2011_v35 = vmul.f32 %v875_v41, %v1516_v38 }
  0xe1   :  { %3375 = vst [vmem:[#allocation118_spill] sm:$0xff] %v2005_v45  ;;  %v2008_v62 = vstv %s3364_s20  ;;  %s2016_s30 = sld [smem:[#allocation6 + $0x5a]]  ;;  %v861_v45 = vstv %s1862_s18  ;;  %3389 = vst [vmem:[#allocation132_spill] sm:$0xff] %v2051_v0 }
  0xe2   :  { %3376 = vst [vmem:[#allocation119_spill] sm:$0xff] %v2008_v62  ;;  %3377 = vst [vmem:[#allocation120_spill] sm:$0xff] %v2011_v35  ;;  %v2014_v61 = vstv %s3367_s9  ;;  %v2032_v62 = vmul.f32 %v861_v45, %v1516_v38  ;;  %v2037_v35 = vmul.f32 0.0, %v845_v46  ;;  %s3390_s11 = sld [smem:[#allocation12_spill]]  ;;  %v2090_v40 = vmul.f32 0.0, %v861_v45 }
  0xe3   :  { %3378 = vst [vmem:[#allocation121_spill] sm:$0xff] %v2014_v61  ;;  %v2019_v63 = vstv %s3369_s23  ;;  %v2042_v61 = vstv %s1890_s19  ;;  %s3391_s3 = sld [smem:[#allocation13_spill]]  ;;  %s1419_s19 = smov 80  }
  0xe4   :  { %3379 = vst [vmem:[#allocation122_spill] sm:$0xff] %v2019_v63  ;;  %v2022_v43 = vstv %s3370_s15  ;;  %3383 = vst [vmem:[#allocation126_spill] sm:$0xff] %v2032_v62  ;;  %v2053_v62 = vpop.permute.xlu1 %218  ;;  %v2060_v63 = vstv %s1934_s0  ;;  %s3403_s18 = sld [smem:[#allocation14_spill]]  ;;  %s1421_s0 = smov [#allocation7]  }
  0xe5   :  { %3380 = vst [vmem:[#allocation123_spill] sm:$0xff] %v2022_v43  ;;  %3385 = vst [vmem:[#allocation128_spill] sm:$0xff] %v2037_v35  ;;  %v2045_v43 = vstv %s1904_s6  ;;  %v163_v35 = vpop.permute.xlu0 %162  ;;  %v227_v46 = vsel %vm224_vm0, %v1978_v9, %v2053_v62  ;;  %s3441_s28 = sld [smem:[#allocation28_spill]] }
  0xe6   :  { %3386 = vst [vmem:[#allocation129_spill] sm:$0xff] %v2042_v61  ;;  %3387 = vst [vmem:[#allocation130_spill] sm:$0xff] %v2045_v43  ;;  %v2063_v61 = vstv %s1948_s26  ;;  %v2065_v43 = vmul.f32 0.0, %v853_v5  ;;  %v171_v0 = vsel %vm168_vm1, %v1892_v3, %v163_v35  ;;  %v2108_v22 = vstv %s2002_s2  ;;  %s3001_s17 = sld [smem:[#allocation6 + $0x48]] }
  0xe7   :  { %3393 = vst [vmem:[#allocation134_spill] sm:$0xff] %v2060_v63  ;;  %3394 = vst [vmem:[#allocation135_spill] sm:$0xff] %v2063_v61  ;;  %v181_v61 = vsel %vm172_vm3, %v171_v0, 0.0  ;;  %v2088_v63 = vstv %s1974_s1  ;;  %s3007_s6 = sld [smem:[#allocation6 + $0x49]] }
  0xe8   :  { %3395 = vst [vmem:[#allocation136_spill] sm:$0xff] %v2065_v43  ;;  %v2083_v43 = vsel %vm228_vm2, %v227_v46, 0.0  ;;  %3398 = vst [vmem:[#allocation139_spill] sm:$0xff] %v2088_v63  ;;  %v3400_v36 = vstv %s3390_s11  ;;  %v2100_v5 = vmul.f32 %v2088_v63, %v1516_v38  ;;  %v2103_v46 = vstv %s1991_s27  ;;  %v2105_v28 = vpop.permute.xlu1 %424  ;;  %s3023_s21 = sld [smem:[#allocation6 + $0x4a]] }
  0xe9   :  { %3399 = vst [vmem:[#allocation140_spill] sm:$0xff] %v2090_v40  ;;  %v266_v34 = vmul.f32 %v3400_v36, %v2083_v43  ;;  %v3401_v33 = vstv %s3391_s3  ;;  %3404 = vst [vmem:[#allocation142_spill] sm:$0xff] %v2103_v46  ;;  %v295_v0 = vpop.permute.xlu0 %294  ;;  %v2111_v40 = vstv %s2016_s30  ;;  %v2114_v36 = vmul.f32 %v861_v45, %v1501_v37  ;;  %s3035_s8 = sld [smem:[#allocation6 + $0x4b]] }
  0xea   :  { %v201_v29 = vmul.f32 %v3401_v33, %v181_v61  ;;  %3402 = vst [vmem:[#allocation141_spill] sm:$0xff] %v2100_v5  ;;  %3405 = vst [vmem:[#allocation143_spill] sm:$0xff] %v2105_v28  ;;  %v2117_v33 = vmul.f32 %v875_v41, %v1501_v37  ;;  %v303_v38 = vsel %vm300_vm4, %v1976_v8, %v295_v0  ;;  %v2123_v5 = vmul.f32 0.0, %v875_v41  ;;  %s3046_s14 = sld [smem:[#allocation6 + $0x4c]] }
  0xeb   :  { %3406 = vst [vmem:[#allocation144_spill] sm:$0xff] %v2108_v22  ;;  %3407 = vst [vmem:[#allocation145_spill] sm:$0xff] %v2111_v40  ;;  %v186_v63 = vmul.f32 %v1694_v54, %v181_v61  ;;  %v313_v22 = vsel %vm3191_vm5, %v303_v38, 0.0  ;;  %v2128_v40 = vmul.f32 %v1697_v55, %v181_v61  ;;  %v2131_v45 = vmul.f32 %v1700_v56, %v181_v61 }
  0xec   :  { %3408 = vst [vmem:[#allocation146_spill] sm:$0xff] %v2114_v36  ;;  %3409 = vst [vmem:[#allocation147_spill] sm:$0xff] %v2117_v33  ;;  %v268_v32 = vadd.f32 %v266_v34, %v201_v29  ;;  %v2134_v37 = vmul.f32 %v1705_v57, %v181_v61  ;;  %v3411_v29 = vstv %s3403_s18  ;;  %v210_v33 = vmul.f32 %v1708_v58, %v181_v61  ;;  %v297_v38 = vpop.permute.xlu1 %296 }
  0xed   :  { %3410 = vst [vmem:[#allocation148_spill] sm:$0xff] %v2123_v5  ;;  %v342_v34 = vmul.f32 %v3411_v29, %v313_v22  ;;  %v2140_v36 = vmul.f32 %v1711_v59, %v181_v61  ;;  %v242_v41 = vmul.f32 %v1714_v60, %v2083_v43  ;;  %v165_v5 = vpop.permute.xlu0 %164  ;;  %v250_v46 = vmul.f32 %v1731_v1, %v2083_v43 }
  0xee   :  { %v258_v31 = vmul.f32 %v1734_v2, %v2083_v43  ;;  %v272_v30 = vmul.f32 %v1737_v4, %v2083_v43  ;;  %v280_v29 = vmul.f32 %v1745_v6, %v2083_v43  ;;  %v301_v61 = vsel %vm300_vm4, %v297_v38, %v1976_v8 }
  0xef   :  { %v2152_v26 = vadd.f32 %v342_v34, %v268_v32  ;;  %v302_v25 = vsel %vm300_vm4, %v295_v0, %v297_v38  ;;  %v169_v27 = vsel %vm168_vm1, %v165_v5, %v1892_v3  ;;  %v318_v24 = vmul.f32 %v1672_v48, %v313_v22 }
  0xf0   :  { %v326_v23 = vmul.f32 %v1677_v49, %v313_v22  ;;  %v314_v21 = vsel %vm3189_vm6, %v302_v25, 0.0  ;;  %v315_v32 = vsel %vm306_vm7, %v301_v61, 0.0  ;;  %v334_v0 = vmul.f32 %v1680_v50, %v313_v22  ;;  %v2183_v17 = vpop.permute.xlu1 %428 }
  0xf1   :  { %3412 = vst [vmem:[#allocation149_spill] sm:$0xff] %v2152_v26  ;;  %v348_v34 = vmul.f32 %v1683_v51, %v313_v22  ;;  %v356_v38 = vmul.f32 %v1686_v52, %v313_v22  ;;  %v170_v8 = vsel %vm168_vm1, %v163_v35, %v165_v5  ;;  %v2176_v3 = vmul.f32 %v1691_v53, %v313_v22 }
  0xf2   :  { %v2179_v25 = vmul.f32 %v1672_v48, %v314_v21  ;;  %v183_v61 = vsel %vm174_vm8, %v169_v27, 0.0  ;;  %3413 = vst [vmem:[#allocation150_spill] sm:$0xff] %v2183_v17  ;;  %v245_v16 = vadd.f32 %v242_v41, %v186_v63  ;;  %v2186_v28 = vmul.f32 %v1672_v48, %v315_v32 }
  0xf3   :  { %v2189_v15 = vmul.f32 %v1677_v49, %v314_v21  ;;  %v2192_v35 = vmul.f32 %v1677_v49, %v315_v32  ;;  %v2195_v22 = vmul.f32 %v1680_v50, %v314_v21  ;;  %v2198_v5 = vmul.f32 %v1680_v50, %v315_v32 }
  0xf4   :  { %v3414_v19 = vstv %s3403_s18  ;;  %v2205_v63 = vmul.f32 %v1683_v51, %v314_v21  ;;  %v182_v48 = vsel %vm173_vm9, %v170_v8, 0.0  ;;  %v2210_v41 = vmul.f32 %v1683_v51, %v315_v32  ;;  %v221_v51 = vpop.permute.xlu0 %220  ;;  %v2227_v14 = vpop.permute.xlu1 %502 }
  0xf5   :  { %v2202_v27 = vmul.f32 %v3414_v19, %v314_v21  ;;  %v2213_v49 = vmul.f32 %v1686_v52, %v314_v21  ;;  %v2216_v17 = vmul.f32 %v1686_v52, %v315_v32  ;;  %v2219_v50 = vmul.f32 %v1691_v53, %v314_v21  ;;  %3420 = vst [vmem:[#allocation156_spill] sm:$0xff] %v2227_v14 }
  0xf6   :  { %3415 = vst [vmem:[#allocation151_spill] sm:$0xff] %v2210_v41  ;;  %v2222_v19 = vmul.f32 %v1691_v53, %v315_v32  ;;  %v187_v20 = vmul.f32 %v1694_v54, %v182_v48  ;;  %v188_v18 = vmul.f32 %v1694_v54, %v183_v61  ;;  %v193_v8 = vmul.f32 %v1697_v55, %v183_v61 }
  0xf7   :  { %3416 = vst [vmem:[#allocation152_spill] sm:$0xff] %v2213_v49  ;;  %3417 = vst [vmem:[#allocation153_spill] sm:$0xff] %v2216_v17  ;;  %v192_v12 = vmul.f32 %v1697_v55, %v182_v48  ;;  %v197_v52 = vmul.f32 %v1700_v56, %v182_v48  ;;  %v198_v17 = vmul.f32 %v1700_v56, %v183_v61  ;;  %v3421_v21 = vstv %s3391_s3 }
  0xf8   :  { %3418 = vst [vmem:[#allocation154_spill] sm:$0xff] %v2219_v50  ;;  %3419 = vst [vmem:[#allocation155_spill] sm:$0xff] %v2222_v19  ;;  %v202_v50 = vmul.f32 %v3421_v21, %v182_v48  ;;  %v206_v53 = vmul.f32 %v1705_v57, %v182_v48  ;;  %v207_v32 = vmul.f32 %v1705_v57, %v183_v61  ;;  %vm513_vm6 = vcmp.lt.s32.totalorder %v1660_v42, 14 }
  0xf9   :  { %v211_v19 = vmul.f32 %v1708_v58, %v182_v48  ;;  %v212_v54 = vmul.f32 %v1708_v58, %v183_v61  ;;  %v216_v49 = vmul.f32 %v1711_v59, %v182_v48  ;;  %v288_v14 = vmul.f32 %v1748_v7, %v2083_v43 }
  0xfa   :  { %v225_v55 = vsel %vm224_vm0, %v221_v51, %v1978_v9  ;;  %v226_v56 = vsel %vm224_vm0, %v2053_v62, %v221_v51  ;;  %v217_v21 = vmul.f32 %v1711_v59, %v183_v61  ;;  %v253_v57 = vadd.f32 %v250_v46, %v2128_v40  ;;  %v2258_v40 = vpop.permute.xlu1 %576 }
  0xfb   :  { %v261_v58 = vadd.f32 %v258_v31, %v2131_v45  ;;  %v275_v48 = vadd.f32 %v272_v30, %v2134_v37  ;;  %v283_v13 = vadd.f32 %v280_v29, %v210_v33  ;;  %v321_v26 = vadd.f32 %v318_v24, %v245_v16  ;;  %3422 = vst [vmem:[#allocation157_spill] sm:$0xff] %v2258_v40 }
  0xfc   :  { %v238_v43 = vsel %vm229_vm10, %v226_v56, 0.0  ;;  %v239_v9 = vsel %vm230_vm11, %v225_v55, 0.0  ;;  %v329_v41 = vadd.f32 %v326_v23, %v253_v57  ;;  %v291_v31 = vadd.f32 %v288_v14, %v2140_v36 }
  0xfd   :  { %v243_v62 = vmul.f32 %v1714_v60, %v238_v43  ;;  %v244_v59 = vmul.f32 %v1714_v60, %v239_v9  ;;  %v251_v61 = vmul.f32 %v1731_v1, %v238_v43  ;;  %v252_v37 = vmul.f32 %v1731_v1, %v239_v9 }
  0xfe   :  { %v259_v16 = vmul.f32 %v1734_v2, %v238_v43  ;;  %v3423_v24 = vstv %s3390_s11  ;;  %v337_v46 = vadd.f32 %v334_v0, %v261_v58  ;;  %v351_v33 = vadd.f32 %v348_v34, %v275_v48 }
  0xff   :  { %v267_v30 = vmul.f32 %v3423_v24, %v238_v43  ;;  %v260_v23 = vmul.f32 %v1734_v2, %v239_v9  ;;  %v273_v45 = vmul.f32 %v1737_v4, %v238_v43  ;;  %v359_v29 = vadd.f32 %v356_v38, %v283_v13  ;;  %v427_v2 = vpop.permute.xlu0 %426 }
 0x100   :  { %v246_v60 = vadd.f32 %v243_v62, %v187_v20  ;;  %v247_v51 = vadd.f32 %v244_v59, %v188_v18  ;;  %v254_v1 = vadd.f32 %v251_v61, %v192_v12  ;;  %v274_v14 = vmul.f32 %v1737_v4, %v239_v9  ;;  %v2278_v4 = vpop.permute.xlu1 %580  ;;  %v3437_v62 = vld [vmem:[#allocation57_spill] sm:$0xff]  ;;  %v3438_v59 = vld [vmem:[#allocation59_spill] sm:$0xff] }
 0x101   :  { %v269_v55 = vadd.f32 %v267_v30, %v202_v50  ;;  %v281_v36 = vmul.f32 %v1745_v6, %v238_v43  ;;  %v282_v0 = vmul.f32 %v1745_v6, %v239_v9  ;;  %v255_v13 = vadd.f32 %v252_v37, %v193_v8  ;;  %3424 = vst [vmem:[#allocation158_spill] sm:$0xff] %v2278_v4 }
 0x102   :  { %v262_v20 = vadd.f32 %v259_v16, %v197_v52  ;;  %v289_v18 = vmul.f32 %v1748_v7, %v238_v43  ;;  %v290_v34 = vmul.f32 %v1748_v7, %v239_v9  ;;  %v263_v38 = vadd.f32 %v260_v23, %v198_v17  ;;  %v3440_v16 = vld [vmem:[#allocation65_spill] sm:$0xff]  ;;  %v3442_v23 = vld [vmem:[#allocation64_spill] sm:$0xff] }
 0x103   :  { %v276_v50 = vadd.f32 %v273_v45, %v206_v53  ;;  %v277_v56 = vadd.f32 %v274_v14, %v207_v32  ;;  %v375_v12 = vadd.f32 %v1760_v10, %v321_v26  ;;  %v284_v57 = vadd.f32 %v281_v36, %v211_v19  ;;  %v3431_v53 = vld [vmem:[#allocation152_spill] sm:$0xff]  ;;  %v3432_v32 = vld [vmem:[#allocation153_spill] sm:$0xff]  ;;  %v3445_v14 = vld [vmem:[#allocation143_spill] sm:$0xff] }
 0x104   :  { %v285_v6 = vadd.f32 %v282_v0, %v212_v54  ;;  %v292_v58 = vadd.f32 %v289_v18, %v216_v49  ;;  %v293_v48 = vadd.f32 %v290_v34, %v217_v21  ;;  %v367_v8 = vadd.f32 %v2176_v3, %v291_v31  ;;  %v3434_v54 = vld [vmem:[#allocation154_spill] sm:$0xff]  ;;  %v3435_v21 = vld [vmem:[#allocation155_spill] sm:$0xff]  ;;  %v2315_v30 = vpop.permute.xlu1 %654 }
 0x105   :  { %v322_v52 = vadd.f32 %v2179_v25, %v246_v60  ;;  %v345_v43 = vadd.f32 %v2202_v27, %v269_v55  ;;  %v383_v7 = vadd.f32 %v1764_v11, %v329_v41  ;;  %v2285_v17 = vadd.f32 %v2186_v28, %v247_v51  ;;  %v3426_v25 = vld [vmem:[#allocation151_spill] sm:$0xff]  ;;  %v3428_v27 = vld [vmem:[#allocation149_spill] sm:$0xff]  ;;  %v3429_v11 = vld [vmem:[#allocation58_spill] sm:$0xff]  ;;  %v2301_v28 = vpop.permute.xlu0 %500 }
 0x106   :  { %v330_v10 = vadd.f32 %v2189_v15, %v254_v1  ;;  %v2289_v26 = vadd.f32 %v2192_v35, %v255_v13  ;;  %v338_v9 = vadd.f32 %v2195_v22, %v262_v20  ;;  %v2293_v49 = vadd.f32 %v2198_v5, %v263_v38  ;;  %3430 = vst [vmem:[#allocation149_spill] sm:$0xff] %v2301_v28  ;;  %v3439_v31 = vld [vmem:[#allocation63_spill] sm:$0xff]  ;;  %v3443_v60 = vld [vmem:[#allocation60_spill] sm:$0xff]  ;;  %v3444_v55 = vld [vmem:[#allocation150_spill] sm:$0xff] }
 0x107   :  { %v352_v3 = vadd.f32 %v2205_v63, %v276_v50  ;;  %v2297_v19 = vadd.f32 %v3426_v25, %v277_v56  ;;  %v398_v41 = vadd.f32 %v3429_v11, %v3428_v27  ;;  %v360_v15 = vadd.f32 %v3431_v53, %v284_v57  ;;  %v3447_v13 = vld [vmem:[#allocation156_spill] sm:$0xff]  ;;  %v3448_v18 = vld [vmem:[#allocation62_spill] sm:$0xff]  ;;  %v3450_v56 = vld [vmem:[#allocation67_spill] sm:$0xff] }
 0x108   :  { %3425 = vst [vmem:[#allocation159_spill] sm:$0xff] %v2293_v49  ;;  %v2305_v35 = vadd.f32 %v3432_v32, %v285_v6  ;;  %v368_v22 = vadd.f32 %v3434_v54, %v292_v58  ;;  %v2309_v5 = vadd.f32 %v3435_v21, %v293_v48  ;;  %v391_v63 = vadd.f32 %v3437_v62, %v337_v46  ;;  %v3449_v38 = vld [vmem:[#allocation66_spill] sm:$0xff]  ;;  %v3452_v58 = vld [vmem:[#allocation68_spill] sm:$0xff]  ;;  %v3493_v49 = vld [vmem:[#allocation93_spill] sm:$0xff] }
 0x109   :  { %3427 = vst [vmem:[#allocation151_spill] sm:$0xff] %v2297_v19  ;;  %v405_v61 = vadd.f32 %v3438_v59, %v351_v33  ;;  %v413_v37 = vadd.f32 %v3439_v31, %v359_v29  ;;  %v399_v24 = vadd.f32 %v3440_v16, %v345_v43  ;;  %v421_v45 = vadd.f32 %v3442_v23, %v367_v8  ;;  %v3446_v33 = vld [vmem:[#allocation61_spill] sm:$0xff]  ;;  %v3453_v8 = vld [vmem:[#allocation71_spill] sm:$0xff]  ;;  %v2347_v11 = vpop.permute.xlu0 %504 }
 0x10a   :  { %3433 = vst [vmem:[#allocation58_spill] sm:$0xff] %v2305_v35  ;;  %3436 = vst [vmem:[#allocation152_spill] sm:$0xff] %v2309_v5  ;;  %v376_v51 = vadd.f32 %v3443_v60, %v322_v52  ;;  %v431_v1 = vsel %vm430_vm15, %v427_v2, %v3444_v55  ;;  %v432_v46 = vsel %vm430_vm15, %v3445_v14, %v427_v2  ;;  %v3451_v2 = vld [vmem:[#allocation89_spill] sm:$0xff]  ;;  %v3454_v43 = vstv %s3441_s28  ;;  %v3458_v60 = vld [vmem:[#allocation72_spill] sm:$0xff] }
 0x10b   :  { %v384_v29 = vadd.f32 %v3446_v33, %v330_v10  ;;  %v443_v36 = vsel %vm3190_vm12, %v432_v46, 0.0  ;;  %v444_v0 = vsel %vm3192_vm13, %v431_v1, 0.0  ;;  %v508_v20 = vsel %vm506_vm14, %v2301_v28, %v3447_v13 }
 0x10c   :  { %v392_v34 = vadd.f32 %v3448_v18, %v338_v9  ;;  %v406_v50 = vadd.f32 %v3449_v38, %v352_v3  ;;  %v448_v57 = vmul.f32 %v3450_v56, %v443_v36  ;;  %v656_v6 = vsel %vm168_vm1, %v2315_v30, %v3451_v2  ;;  %v3456_v9 = vld [vmem:[#allocation69_spill] sm:$0xff]  ;;  %v3457_v3 = vld [vmem:[#allocation70_spill] sm:$0xff] }
 0x10d   :  { %v456_v48 = vmul.f32 %v3452_v58, %v443_v36  ;;  %v464_v52 = vmul.f32 %v3453_v8, %v443_v36  ;;  %v472_v10 = vmul.f32 %v3454_v43, %v443_v36  ;;  %v3455_v25 = vmov %v3454_v43 }
 0x10e   :  { %v473_v27 = vmul.f32 %v3455_v25, %v444_v0  ;;  %v414_v53 = vadd.f32 %v3456_v9, %v360_v15  ;;  %v422_v32 = vadd.f32 %v3457_v3, %v368_v22  ;;  %v449_v54 = vmul.f32 %v3450_v56, %v444_v0  ;;  %v3465_v3 = vld [vmem:[#allocation78_spill] sm:$0xff] }
 0x10f   :  { %v519_v21 = vsel %vm513_vm6, %v508_v20, 0.0  ;;  %vm589_vm12 = vcmp.lt.s32.totalorder %v1660_v42, 13  ;;  %v457_v62 = vmul.f32 %v3452_v58, %v444_v0  ;;  %v474_v59 = vadd.f32 %v472_v10, %v398_v41 }
 0x110   :  { %v2356_v31 = vadd.f32 %v473_v27, %v399_v24  ;;  %v661_v16 = vsel %vm174_vm8, %v656_v6, 0.0  ;;  %vm582_vm5 = vcmp.lt.s32.totalorder %v1643_v39, 125  ;;  %vm590_vm13 = vcmp.lt.s32.totalorder %v1663_v44, 13  ;;  %v3459_v24 = vld [vmem:[#allocation73_spill] sm:$0xff]  ;;  %v3460_v6 = vld [vmem:[#allocation74_spill] sm:$0xff]  ;;  %v3462_v27 = vld [vmem:[#allocation76_spill] sm:$0xff] }
 0x111   :  { %v451_v15 = vadd.f32 %v448_v57, %v375_v12  ;;  %v2362_v22 = vadd.f32 %v449_v54, %v376_v51  ;;  %v465_v23 = vmul.f32 %v3453_v8, %v444_v0  ;;  %v478_v1 = vmul.f32 %v3458_v60, %v443_v36  ;;  %v3461_v12 = vld [vmem:[#allocation75_spill] sm:$0xff]  ;;  %v3468_v8 = vld [vmem:[#allocation81_spill] sm:$0xff]  ;;  %v3602_v39 = vld [vmem:[#allocation126_spill] sm:$0xff] }
 0x112   :  { %v459_v46 = vadd.f32 %v456_v48, %v383_v7  ;;  %v2366_v33 = vadd.f32 %v457_v62, %v384_v29  ;;  %v467_v41 = vadd.f32 %v464_v52, %v391_v63  ;;  %v486_v20 = vmul.f32 %v3459_v24, %v443_v36  ;;  %v579_v29 = vpop.permute.xlu0 %578  ;;  %v3463_v63 = vld [vmem:[#allocation77_spill] sm:$0xff] }
 0x113   :  { %v2369_v18 = vadd.f32 %v465_v23, %v392_v34  ;;  %v479_v38 = vmul.f32 %v3458_v60, %v444_v0  ;;  %v494_v43 = vmul.f32 %v3460_v6, %v443_v36  ;;  %v524_v51 = vmul.f32 %v3461_v12, %v519_v21  ;;  %v3466_v23 = vld [vmem:[#allocation79_spill] sm:$0xff] }
 0x114   :  { %v481_v57 = vadd.f32 %v478_v1, %v405_v61  ;;  %v487_v10 = vmul.f32 %v3459_v24, %v444_v0  ;;  %v495_v25 = vmul.f32 %v3460_v6, %v444_v0  ;;  %v532_v7 = vmul.f32 %v3462_v27, %v519_v21  ;;  %v3467_v1 = vld [vmem:[#allocation80_spill] sm:$0xff] }
 0x115   :  { %v2377_v48 = vadd.f32 %v479_v38, %v406_v50  ;;  %v540_v52 = vmul.f32 %v3463_v63, %v519_v21  ;;  %v3464_v34 = vstv %s3294_s4  ;;  %v554_v54 = vmul.f32 %v3465_v3, %v519_v21  ;;  %v2389_v50 = vpop.permute.xlu1 %718 }
 0x116   :  { %v548_v9 = vmul.f32 %v3464_v34, %v519_v21  ;;  %v489_v62 = vadd.f32 %v486_v20, %v413_v37  ;;  %v2383_v36 = vadd.f32 %v487_v10, %v414_v53  ;;  %v562_v61 = vmul.f32 %v3466_v23, %v519_v21  ;;  %v3470_v34 = vld [vmem:[#allocation82_spill] sm:$0xff]  ;;  %v3472_v37 = vld [vmem:[#allocation83_spill] sm:$0xff] }
 0x117   :  { %v570_v28 = vmul.f32 %v3467_v1, %v519_v21  ;;  %v497_v24 = vadd.f32 %v494_v43, %v421_v45  ;;  %v2387_v0 = vadd.f32 %v495_v25, %v422_v32  ;;  %v527_v6 = vadd.f32 %v524_v51, %v451_v15  ;;  %v3474_v43 = vld [vmem:[#allocation112_spill] sm:$0xff]  ;;  %v653_v51 = vpop.permute.xlu0 %652  ;;  %v3477_v25 = vld [vmem:[#allocation86_spill] sm:$0xff] }
 0x118   :  { %v550_v60 = vadd.f32 %v548_v9, %v474_v59  ;;  %v535_v38 = vadd.f32 %v532_v7, %v459_v46  ;;  %v2392_v58 = vmul.f32 %v3468_v8, %v661_v16  ;;  %v2395_v56 = vmul.f32 %v3470_v34, %v661_v16 }
 0x119   :  { %v2398_v53 = vmul.f32 %v3472_v37, %v661_v16  ;;  %v543_v20 = vadd.f32 %v540_v52, %v467_v41  ;;  %v557_v21 = vadd.f32 %v554_v54, %v481_v57  ;;  %v583_v45 = vsel %vm582_vm5, %v579_v29, %v2278_v4  ;;  %v3475_v57 = vld [vmem:[#allocation85_spill] sm:$0xff]  ;;  %v3479_v52 = vld [vmem:[#allocation84_spill] sm:$0xff] }
 0x11a   :  { %3469 = vst [vmem:[#allocation153_spill] sm:$0xff] %v2392_v58  ;;  %3471 = vst [vmem:[#allocation154_spill] sm:$0xff] %v2395_v56  ;;  %v584_v32 = vsel %vm582_vm5, %v2258_v40, %v579_v29  ;;  %v565_v59 = vadd.f32 %v562_v61, %v489_v62  ;;  %v573_v15 = vadd.f32 %v570_v28, %v497_v24  ;;  %v596_v29 = vsel %vm590_vm13, %v583_v45, 0.0  ;;  %v3480_v24 = vld [vmem:[#allocation87_spill] sm:$0xff]  ;;  %v3482_v54 = vld [vmem:[#allocation88_spill] sm:$0xff] }
 0x11b   :  { %3473 = vst [vmem:[#allocation155_spill] sm:$0xff] %v2398_v53  ;;  %v595_v46 = vsel %vm589_vm12, %v584_v32, 0.0  ;;  %v720_v41 = vsel %vm224_vm0, %v2389_v50, %v3474_v43  ;;  %v2413_v10 = vmul.f32 %v3475_v57, %v661_v16  ;;  %v2416_v7 = vmul.f32 %v3477_v25, %v661_v16  ;;  %v3483_v61 = vld [vmem:[#allocation90_spill] sm:$0xff]  ;;  %v3485_v58 = vld [vmem:[#allocation91_spill] sm:$0xff]  ;;  %v3489_v4 = vld [vmem:[#allocation92_spill] sm:$0xff] }
 0x11c   :  { %v600_v28 = vmul.f32 %v3479_v52, %v595_v46  ;;  %v2422_v9 = vmul.f32 %v3480_v24, %v661_v16  ;;  %v608_v62 = vmul.f32 %v3482_v54, %v595_v46  ;;  %v616_v32 = vmul.f32 %v3483_v61, %v595_v46 }
 0x11d   :  { %3476 = vst [vmem:[#allocation57_spill] sm:$0xff] %v2413_v10  ;;  %3478 = vst [vmem:[#allocation59_spill] sm:$0xff] %v2416_v7  ;;  %v3484_v53 = vstv %s3318_s12  ;;  %v630_v10 = vmul.f32 %v3485_v58, %v595_v46  ;;  %v725_v7 = vsel %vm230_vm11, %v720_v41, 0.0  ;;  %v657_v45 = vsel %vm168_vm1, %v653_v51, %v2315_v30 }
 0x11e   :  { %3481 = vst [vmem:[#allocation63_spill] sm:$0xff] %v2422_v9  ;;  %v624_v56 = vmul.f32 %v3484_v53, %v595_v46  ;;  %v658_v16 = vsel %vm168_vm1, %v3451_v2, %v653_v51  ;;  %v2438_v9 = vmul.f32 %v3479_v52, %v596_v29  ;;  %v2441_v40 = vmul.f32 %v3482_v54, %v596_v29  ;;  %v2456_v51 = vpop.permute.xlu1 %782 }
 0x11f   :  { %v638_v5 = vmul.f32 %v3489_v4, %v595_v46  ;;  %v2446_v35 = vadd.f32 %v600_v28, %v527_v6  ;;  %v2449_v41 = vmul.f32 %v3483_v61, %v596_v29  ;;  %v3491_v30 = vstv %s3318_s12  ;;  %s1417_s12 = smov 112  }
 0x120   :  { %3486 = vst [vmem:[#allocation65_spill] sm:$0xff] %v2438_v9  ;;  %3487 = vst [vmem:[#allocation64_spill] sm:$0xff] %v2441_v40  ;;  %v2443_v53 = vadd.f32 %v624_v56, %v550_v60  ;;  %v2453_v19 = vmul.f32 %v3491_v30, %v596_v29  ;;  %v646_v2 = vmul.f32 %v3493_v49, %v595_v46  ;;  %v3497_v30 = vld [vmem:[#allocation94_spill] sm:$0xff]  ;;  %vm514_vm1 = vcmp.lt.s32.totalorder %v1663_v44, 14 }
 0x121   :  { %3490 = vst [vmem:[#allocation150_spill] sm:$0xff] %v2449_v41  ;;  %v2458_v9 = vadd.f32 %v608_v62, %v535_v38  ;;  %v2460_v54 = vadd.f32 %v616_v32, %v543_v20  ;;  %v2463_v56 = vmul.f32 %v3485_v58, %v596_v29  ;;  %v2466_v60 = vmul.f32 %v3489_v4, %v596_v29  ;;  %v3500_v20 = vld [vmem:[#allocation95_spill] sm:$0xff]  ;;  %v3502_v32 = vld [vmem:[#allocation97_spill] sm:$0xff] }
 0x122   :  { %3488 = vst [vmem:[#allocation60_spill] sm:$0xff] %v2443_v53  ;;  %3492 = vst [vmem:[#allocation143_spill] sm:$0xff] %v2453_v19  ;;  %v2468_v6 = vadd.f32 %v630_v10, %v557_v21  ;;  %v2471_v28 = vmul.f32 %v3493_v49, %v596_v29  ;;  %v2474_v19 = vmul.f32 %v3497_v30, %v725_v7  ;;  %v659_v38 = vsel %vm172_vm3, %v658_v16, 0.0  ;;  %v3505_v29 = vld [vmem:[#allocation98_spill] sm:$0xff] }
 0x123   :  { %3494 = vst [vmem:[#allocation61_spill] sm:$0xff] %v2463_v56  ;;  %3495 = vst [vmem:[#allocation156_spill] sm:$0xff] %v2466_v60  ;;  %v2478_v46 = vadd.f32 %v638_v5, %v565_v59  ;;  %v2481_v62 = vmul.f32 %v3500_v20, %v725_v7  ;;  %v2484_v53 = vmul.f32 %v3502_v32, %v725_v7  ;;  %v660_v21 = vsel %vm173_vm9, %v657_v45, 0.0  ;;  %v3507_v60 = vld [vmem:[#allocation99_spill] sm:$0xff]  ;;  %v3509_v5 = vld [vmem:[#allocation101_spill] sm:$0xff]  ;;  %v717_v56 = vpop.permute.xlu0 %716 }
 0x124   :  { %3496 = vst [vmem:[#allocation62_spill] sm:$0xff] %v2471_v28  ;;  %3498 = vst [vmem:[#allocation66_spill] sm:$0xff] %v2474_v19  ;;  %v2488_v10 = vadd.f32 %v646_v2, %v573_v15  ;;  %v2491_v28 = vmul.f32 %v3505_v29, %v725_v7  ;;  %v2494_v16 = vmul.f32 %v3507_v60, %v725_v7  ;;  %vm3547_vm3 = vcmp.lt.s32.totalorder %v1663_v44, 15 }
 0x125   :  { %3499 = vst [vmem:[#allocation89_spill] sm:$0xff] %v2478_v46  ;;  %3501 = vst [vmem:[#allocation69_spill] sm:$0xff] %v2481_v62  ;;  %v2497_v59 = vmul.f32 %v3509_v5, %v725_v7  ;;  %v2501_v41 = vmul.f32 %v3468_v8, %v659_v38  ;;  %v2504_v45 = vmul.f32 %v3468_v8, %v660_v21  ;;  %v2526_v62 = vpop.permute.xlu1 %900  ;;  %vm591_vm8 = vcmp.lt.s32.totalorder %v1669_v47, 13 }
 0x126   :  { %3503 = vst [vmem:[#allocation70_spill] sm:$0xff] %v2484_v53  ;;  %3504 = vst [vmem:[#allocation75_spill] sm:$0xff] %v2488_v10  ;;  %v2507_v15 = vmul.f32 %v3470_v34, %v659_v38  ;;  %v2510_v2 = vmul.f32 %v3472_v37, %v659_v38  ;;  %v2516_v7 = vmul.f32 %v3472_v37, %v660_v21  ;;  %v3516_v53 = vld [vmem:[#allocation111_spill] sm:$0xff]  ;;  %v3556_v10 = vld [vmem:[#allocation100_spill] sm:$0xff]  ;;  %vm3576_vm9 = vcmp.lt.s32.totalorder %v1660_v42, 15 }
 0x127   :  { %3506 = vst [vmem:[#allocation76_spill] sm:$0xff] %v2491_v28  ;;  %3508 = vst [vmem:[#allocation77_spill] sm:$0xff] %v2494_v16  ;;  %v2513_v16 = vmul.f32 %v3470_v34, %v660_v21  ;;  %v784_v8 = vsel %vm300_vm4, %v2456_v51, %v3516_v53  ;;  %v721_v37 = vsel %vm224_vm0, %v717_v56, %v2389_v50 }
 0x128   :  { %3510 = vst [vmem:[#allocation78_spill] sm:$0xff] %v2497_v59  ;;  %3511 = vst [vmem:[#allocation79_spill] sm:$0xff] %v2504_v45  ;;  %v3514_v59 = vstv %s1645_s13  ;;  %v789_v34 = vsel %vm306_vm7, %v784_v8, 0.0  ;;  %v2553_v8 = vmul.f32 %v3480_v24, %v659_v38  ;;  %v2556_v50 = vmul.f32 %v3480_v24, %v660_v21  ;;  %s1415_s13 = smov 32  }
 0x129   :  { %3512 = vst [vmem:[#allocation80_spill] sm:$0xff] %v2513_v16  ;;  %3513 = vst [vmem:[#allocation81_spill] sm:$0xff] %v2516_v7  ;;  %v2520_v28 = vmul.f32 %v3514_v59, %v659_v38  ;;  %v3517_v40 = vmov %v3514_v59  ;;  %v722_v59 = vsel %vm224_vm0, %v3474_v43, %v717_v56  ;;  %v2544_v7 = vmul.f32 %v3475_v57, %v660_v21  ;;  %v3526_v56 = vld [vmem:[#allocation102_spill] sm:$0xff]  ;;  %v3528_v16 = vld [vmem:[#allocation104_spill] sm:$0xff] }
 0x12a   :  { %v2530_v45 = vmul.f32 %v3517_v40, %v660_v21  ;;  %v2547_v40 = vmul.f32 %v3477_v25, %v659_v38  ;;  %3522 = vst [vmem:[#allocation84_spill] sm:$0xff] %v2553_v8  ;;  %3523 = vst [vmem:[#allocation87_spill] sm:$0xff] %v2556_v50  ;;  %v2560_v43 = vsel %vm228_vm2, %v722_v59, 0.0  ;;  %v902_v24 = vsel %vm430_vm15, %v2526_v62, %v3444_v55  ;;  %v3532_v59 = vld [vmem:[#allocation109_spill] sm:$0xff]  ;;  %v3534_v50 = vld [vmem:[#allocation110_spill] sm:$0xff] }
 0x12b   :  { %3515 = vst [vmem:[#allocation82_spill] sm:$0xff] %v2520_v28  ;;  %v2541_v28 = vmul.f32 %v3475_v57, %v659_v38  ;;  %3519 = vst [vmem:[#allocation112_spill] sm:$0xff] %v2544_v7  ;;  %v2564_v57 = vsel %vm229_vm10, %v721_v37, 0.0  ;;  %v2567_v7 = vmul.f32 %v3526_v56, %v789_v34  ;;  %vm439_vm0 = vcmp.lt.s32.totalorder %v1669_v47, 15 }
 0x12c   :  { %3518 = vst [vmem:[#allocation83_spill] sm:$0xff] %v2530_v45  ;;  %3520 = vst [vmem:[#allocation85_spill] sm:$0xff] %v2547_v40  ;;  %v2550_v45 = vmul.f32 %v3477_v25, %v660_v21  ;;  %v2570_v25 = vmul.f32 %v3528_v16, %v789_v34  ;;  %v781_v21 = vpop.permute.xlu0 %780  ;;  %v2581_v37 = vmul.f32 %v3532_v59, %v789_v34  ;;  %vm515_vm2 = vcmp.lt.s32.totalorder %v1669_v47, 14 }
 0x12d   :  { %3524 = vst [vmem:[#allocation90_spill] sm:$0xff] %v2560_v43  ;;  %3525 = vst [vmem:[#allocation91_spill] sm:$0xff] %v2564_v57  ;;  %v2584_v19 = vmul.f32 %v3534_v50, %v789_v34  ;;  %v2599_v46 = vmul.f32 %v3500_v20, %v2560_v43  ;;  %vm3550_vm7 = vcmp.ge.s32.totalorder %v1663_v44, 1 }
 0x12e   :  { %3521 = vst [vmem:[#allocation86_spill] sm:$0xff] %v2550_v45  ;;  %3527 = vst [vmem:[#allocation92_spill] sm:$0xff] %v2567_v7  ;;  %v3530_v45 = vld [vmem:[#allocation108_spill] sm:$0xff]  ;;  %v3536_v7 = vld [vmem:[#allocation113_spill] sm:$0xff] }
 0x12f   :  { %3529 = vst [vmem:[#allocation93_spill] sm:$0xff] %v2570_v25  ;;  %v2573_v38 = vmul.f32 %v3530_v45, %v789_v34  ;;  %3533 = vst [vmem:[#allocation95_spill] sm:$0xff] %v2581_v37  ;;  %v2587_v40 = vmul.f32 %v3536_v7, %v789_v34  ;;  %v2595_v25 = vmul.f32 %v3497_v30, %v2564_v57 }
 0x130   :  { %3535 = vst [vmem:[#allocation97_spill] sm:$0xff] %v2584_v19  ;;  %v2603_v37 = vmul.f32 %v3500_v20, %v2564_v57  ;;  %v2607_v34 = vmul.f32 %v3502_v32, %v2560_v43  ;;  %v2611_v19 = vmul.f32 %v3502_v32, %v2564_v57  ;;  %v2623_v20 = vmul.f32 %v3507_v60, %v2560_v43 }
 0x131   :  { %3531 = vst [vmem:[#allocation94_spill] sm:$0xff] %v2573_v38  ;;  %3537 = vst [vmem:[#allocation98_spill] sm:$0xff] %v2587_v40  ;;  %v2591_v38 = vmul.f32 %v3497_v30, %v2560_v43  ;;  %v965_v40 = vpop.permute.xlu1 %964  ;;  %v2615_v30 = vmul.f32 %v3505_v29, %v2560_v43  ;;  %v2631_v32 = vmul.f32 %v3509_v5, %v2560_v43 }
 0x132   :  { %3538 = vst [vmem:[#allocation99_spill] sm:$0xff] %v2595_v25  ;;  %3539 = vst [vmem:[#allocation101_spill] sm:$0xff] %v2603_v37  ;;  %v2619_v25 = vmul.f32 %v3505_v29, %v2564_v57  ;;  %v2627_v37 = vmul.f32 %v3507_v60, %v2564_v57  ;;  %v507_v29 = vsel %vm506_vm14, %v3447_v13, %v2347_v11 }
 0x133   :  { %3540 = vst [vmem:[#allocation111_spill] sm:$0xff] %v2611_v19  ;;  %3542 = vst [vmem:[#allocation104_spill] sm:$0xff] %v2623_v20  ;;  %v2635_v19 = vmul.f32 %v3509_v5, %v2564_v57  ;;  %v786_v60 = vsel %vm300_vm4, %v3516_v53, %v781_v21  ;;  %v520_v43 = vsel %vm514_vm1, %v507_v29, 0.0  ;;  %v966_v5 = vsel %vm506_vm14, %v965_v40, %v2347_v11  ;;  %v899_v20 = vpop.permute.xlu0 %898 }
 0x134   :  { %3541 = vst [vmem:[#allocation102_spill] sm:$0xff] %v2619_v25  ;;  %3543 = vst [vmem:[#allocation108_spill] sm:$0xff] %v2627_v37  ;;  %v785_v25 = vsel %vm300_vm4, %v781_v21, %v2456_v51  ;;  %v525_v57 = vmul.f32 %v3461_v12, %v520_v43  ;;  %v533_v13 = vmul.f32 %v3462_v27, %v520_v43  ;;  %v3546_v51 = vstv %s3294_s4  ;;  %s1416_s4 = smov 48  }
 0x135   :  { %3544 = vst [vmem:[#allocation109_spill] sm:$0xff] %v2631_v32  ;;  %3545 = vst [vmem:[#allocation160_spill] sm:$0xff] %v2635_v19  ;;  %v541_v19 = vmul.f32 %v3463_v63, %v520_v43  ;;  %v549_v37 = vmul.f32 %v3546_v51, %v520_v43  ;;  %v2660_v53 = vsel %vm3547_vm3, %v902_v24, 0.0  ;;  %v555_v21 = vmul.f32 %v3465_v3, %v520_v43 }
 0x136   :  { %3548 = vst [vmem:[#allocation161_spill] sm:$0xff] %v2660_v53  ;;  %v563_v29 = vmul.f32 %v3466_v23, %v520_v43  ;;  %v571_v50 = vmul.f32 %v3467_v1, %v520_v43  ;;  %vm3549_vm4 = vcmp.ge.s32.totalorder %v1660_v42, 1  ;;  %v2671_v7 = vsel %vm3550_vm7, %v785_v25, 0.0 }
 0x137   :  { %v2667_v32 = vsel %vm3549_vm4, %v786_v60, 0.0  ;;  %3551 = vst [vmem:[#allocation162_spill] sm:$0xff] %v2671_v7  ;;  %v2674_v51 = vadd.f32 %v549_v37, %v2356_v31  ;;  %v2678_v24 = vsel %vm514_vm1, %v966_v5, 0.0  ;;  %v2681_v53 = vadd.f32 %v525_v57, %v2362_v22  ;;  %v3555_v60 = vld [vmem:[#allocation96_spill] sm:$0xff] }
 0x138   :  { %3553 = vst [vmem:[#allocation164_spill] sm:$0xff] %v2678_v24  ;;  %v2684_v43 = vadd.f32 %v533_v13, %v2366_v33  ;;  %v377_v8 = vadd.f32 %v3555_v60, %v2285_v17  ;;  %v385_v25 = vadd.f32 %v3556_v10, %v2289_v26  ;;  %v2692_v31 = vadd.f32 %v541_v19, %v2369_v18  ;;  %v1029_v17 = vpop.permute.xlu1 %1028  ;;  %v3561_v26 = vld [vmem:[#allocation159_spill] sm:$0xff]  ;;  %v3567_v60 = vld [vmem:[#allocation152_spill] sm:$0xff] }
 0x139   :  { %3552 = vst [vmem:[#allocation163_spill] sm:$0xff] %v2674_v51  ;;  %v2695_v37 = vadd.f32 %v555_v21, %v2377_v48  ;;  %v2698_v22 = vadd.f32 %v563_v29, %v2383_v36  ;;  %v433_v33 = vsel %vm430_vm15, %v3444_v55, %v3445_v14  ;;  %v2705_v57 = vadd.f32 %v571_v50, %v2387_v0  ;;  %v3562_v10 = vld [vmem:[#allocation103_spill] sm:$0xff]  ;;  %v3564_v36 = vld [vmem:[#allocation105_spill] sm:$0xff]  ;;  %v3565_v21 = vld [vmem:[#allocation58_spill] sm:$0xff] }
 0x13a   :  { %3554 = vst [vmem:[#allocation165_spill] sm:$0xff] %v2684_v43  ;;  %3557 = vst [vmem:[#allocation96_spill] sm:$0xff] %v2692_v31  ;;  %v393_v5 = vadd.f32 %v3562_v10, %v3561_v26  ;;  %v445_v19 = vsel %vm439_vm0, %v433_v33, 0.0  ;;  %v903_v18 = vsel %vm430_vm15, %v899_v20, %v2526_v62  ;;  %v3563_v48 = vld [vmem:[#allocation151_spill] sm:$0xff]  ;;  %v3566_v29 = vld [vmem:[#allocation106_spill] sm:$0xff]  ;;  %v904_v50 = vsel %vm430_vm15, %v3444_v55, %v899_v20  ;;  %v963_v26 = vpop.permute.xlu0 %962 }
 0x13b   :  { %3558 = vst [vmem:[#allocation100_spill] sm:$0xff] %v2695_v37  ;;  %3559 = vst [vmem:[#allocation166_spill] sm:$0xff] %v2698_v22  ;;  %v407_v13 = vadd.f32 %v3564_v36, %v3563_v48  ;;  %v415_v14 = vadd.f32 %v3566_v29, %v3565_v21  ;;  %v3568_v51 = vld [vmem:[#allocation107_spill] sm:$0xff]  ;;  %v3572_v31 = vld [vmem:[#allocation158_spill] sm:$0xff]  ;;  %v2734_v55 = vsel %vm3576_vm9, %v903_v18, 0.0  ;;  %v667_v42 = vadd.f32 %v2501_v41, %v2446_v35 }
 0x13c   :  { %3560 = vst [vmem:[#allocation167_spill] sm:$0xff] %v2705_v57  ;;  %v423_v0 = vadd.f32 %v3568_v51, %v3567_v60  ;;  %v3569_v10 = vld [vmem:[#allocation67_spill] sm:$0xff]  ;;  %v3570_v57 = vld [vmem:[#allocation68_spill] sm:$0xff]  ;;  %v1030_v48 = vsel %vm582_vm5, %v1029_v17, %v3572_v31  ;;  %v3574_v29 = vld [vmem:[#allocation73_spill] sm:$0xff] }
 0x13d   :  { %v450_v33 = vmul.f32 %v3569_v10, %v445_v19  ;;  %v458_v22 = vmul.f32 %v3570_v57, %v445_v19  ;;  %v3571_v37 = vld [vmem:[#allocation71_spill] sm:$0xff]  ;;  %v3573_v36 = vld [vmem:[#allocation72_spill] sm:$0xff]  ;;  %v488_v24 = vmul.f32 %v3574_v29, %v445_v19  ;;  %v3575_v51 = vld [vmem:[#allocation74_spill] sm:$0xff]  ;;  %v2738_v57 = vsel %vm439_vm0, %v904_v50, 0.0 }
 0x13e   :  { %v466_v62 = vmul.f32 %v3571_v37, %v445_v19  ;;  %v480_v21 = vmul.f32 %v3573_v36, %v445_v19  ;;  %v496_v60 = vmul.f32 %v3575_v51, %v445_v19  ;;  %v3577_v37 = vld [vmem:[#allocation149_spill] sm:$0xff]  ;;  %v967_v19 = vsel %vm506_vm14, %v963_v26, %v965_v40  ;;  %v3584_v35 = vld [vmem:[#allocation119_spill] sm:$0xff] }
 0x13f   :  { %v453_v20 = vadd.f32 %v450_v33, %v377_v8  ;;  %v461_v10 = vadd.f32 %v458_v22, %v385_v25  ;;  %v509_v43 = vsel %vm506_vm14, %v2347_v11, %v3577_v37  ;;  %v968_v8 = vsel %vm506_vm14, %v2347_v11, %v963_v26  ;;  %v3578_v25 = vld [vmem:[#allocation157_spill] sm:$0xff]  ;;  %v1027_v11 = vpop.permute.xlu0 %1026 }
 0x140   :  { %v521_v36 = vsel %vm515_vm2, %v509_v43, 0.0  ;;  %v585_v22 = vsel %vm582_vm5, %v3572_v31, %v3578_v25  ;;  %v469_v29 = vadd.f32 %v466_v62, %v393_v5  ;;  %v483_v51 = vadd.f32 %v480_v21, %v407_v13 }
 0x141   :  { %v526_v18 = vmul.f32 %v3461_v12, %v521_v36  ;;  %v534_v50 = vmul.f32 %v3462_v27, %v521_v36  ;;  %v542_v33 = vmul.f32 %v3463_v63, %v521_v36  ;;  %v556_v43 = vmul.f32 %v3465_v3, %v521_v36 }
 0x142   :  { %v564_v40 = vmul.f32 %v3466_v23, %v521_v36  ;;  %v572_v37 = vmul.f32 %v3467_v1, %v521_v36  ;;  %v491_v26 = vadd.f32 %v488_v24, %v415_v14  ;;  %v499_v7 = vadd.f32 %v496_v60, %v423_v0  ;;  %v3579_v0 = vld [vmem:[#allocation88_spill] sm:$0xff] }
 0x143   :  { %v2763_v25 = vsel %vm590_vm13, %v1030_v48, 0.0  ;;  %v2767_v12 = vsel %vm513_vm6, %v967_v19, 0.0  ;;  %v529_v27 = vadd.f32 %v526_v18, %v453_v20  ;;  %v537_v63 = vadd.f32 %v534_v50, %v461_v10  ;;  %v3581_v19 = vld [vmem:[#allocation115_spill] sm:$0xff]  ;;  %v3583_v18 = vld [vmem:[#allocation117_spill] sm:$0xff] }
 0x144   :  { %v2771_v3 = vsel %vm515_vm2, %v968_v8, 0.0  ;;  %v597_v23 = vsel %vm591_vm8, %v585_v22, 0.0  ;;  %v545_v1 = vadd.f32 %v542_v33, %v469_v29  ;;  %v559_v24 = vadd.f32 %v556_v43, %v483_v51  ;;  %v3585_v51 = vld [vmem:[#allocation122_spill] sm:$0xff] }
 0x145   :  { %v567_v5 = vadd.f32 %v564_v40, %v491_v26  ;;  %v1031_v44 = vsel %vm582_vm5, %v1027_v11, %v1029_v17  ;;  %v2777_v13 = vadd.f32 %v572_v37, %v499_v7  ;;  %v602_v14 = vmul.f32 %v3479_v52, %v597_v23  ;;  %v3586_v37 = vld [vmem:[#allocation123_spill] sm:$0xff] }
 0x146   :  { %v610_v62 = vmul.f32 %v3579_v0, %v597_v23  ;;  %v618_v48 = vmul.f32 %v3483_v61, %v597_v23  ;;  %v632_v21 = vmul.f32 %v3485_v58, %v597_v23  ;;  %v640_v60 = vmul.f32 %v3489_v4, %v597_v23 }
 0x147   :  { %v2785_v20 = vmul.f32 %v3493_v49, %v597_v23  ;;  %v2790_v10 = vsel %vm582_vm5, %v3572_v31, %v1027_v11  ;;  %v605_v7 = vadd.f32 %v602_v14, %v529_v27  ;;  %v2796_v52 = vsel %vm589_vm12, %v1031_v44, 0.0  ;;  %v3587_v27 = vld [vmem:[#allocation114_spill] sm:$0xff]  ;;  %v3588_v23 = vld [vmem:[#allocation121_spill] sm:$0xff] }
 0x148   :  { %v2792_v17 = vadd.f32 %v610_v62, %v537_v63  ;;  %v675_v58 = vadd.f32 %v2507_v15, %v2458_v9  ;;  %v2800_v61 = vadd.f32 %v618_v48, %v545_v1  ;;  %v2802_v4 = vadd.f32 %v632_v21, %v559_v24  ;;  %v3582_v15 = vld [vmem:[#allocation116_spill] sm:$0xff]  ;;  %v3590_v14 = vld [vmem:[#allocation125_spill] sm:$0xff]  ;;  %v3591_v62 = vld [vmem:[#allocation75_spill] sm:$0xff] }
 0x149   :  { %v2804_v49 = vadd.f32 %v640_v60, %v567_v5  ;;  %v800_v31 = vmul.f32 %v3528_v16, %v2667_v32  ;;  %v918_v8 = vmul.f32 %v3581_v19, %v2734_v55  ;;  %v792_v9 = vmul.f32 %v3526_v56, %v2667_v32  ;;  %v3589_v24 = vld [vmem:[#allocation124_spill] sm:$0xff]  ;;  %v3593_v21 = vld [vmem:[#allocation118_spill] sm:$0xff] }
 0x14a   :  { %v739_v36 = vadd.f32 %v2599_v46, %v675_v58  ;;  %v982_v22 = vmul.f32 %v3582_v15, %v2767_v12  ;;  %v1046_v50 = vmul.f32 %v3583_v18, %v2796_v52  ;;  %v697_v33 = vadd.f32 %v2541_v28, %v2468_v6  ;;  %v3594_v58 = vld [vmem:[#allocation127_spill] sm:$0xff] }
 0x14b   :  { %3580 = vst [vmem:[#allocation159_spill] sm:$0xff] %v2804_v49  ;;  %v822_v46 = vmul.f32 %v3532_v59, %v2667_v32  ;;  %v731_v29 = vadd.f32 %v2591_v38, %v667_v42  ;;  %v910_v41 = vmul.f32 %v3584_v35, %v2734_v55  ;;  %v974_v40 = vmul.f32 %v3585_v51, %v2767_v12 }
 0x14c   :  { %v803_v43 = vadd.f32 %v800_v31, %v739_v36  ;;  %v1038_v11 = vmul.f32 %v3586_v37, %v2796_v52  ;;  %v761_v26 = vadd.f32 %v2615_v30, %v697_v33  ;;  %v683_v6 = vadd.f32 %v2510_v2, %v2460_v54  ;;  %v3592_v54 = vld [vmem:[#allocation84_spill] sm:$0xff]  ;;  %v3595_v36 = vld [vmem:[#allocation113_spill] sm:$0xff] }
 0x14d   :  { %v808_v28 = vmul.f32 %v3530_v45, %v2667_v32  ;;  %v795_v38 = vadd.f32 %v792_v9, %v731_v29  ;;  %v940_v1 = vmul.f32 %v3588_v23, %v2734_v55  ;;  %v1004_v5 = vmul.f32 %v3589_v24, %v2767_v12  ;;  %v3596_v9 = vld [vmem:[#allocation120_spill] sm:$0xff]  ;;  %v3607_v24 = vld [vmem:[#allocation135_spill] sm:$0xff] }
 0x14e   :  { %v857_v63 = vadd.f32 %v3587_v27, %v803_v43  ;;  %v825_v44 = vadd.f32 %v822_v46, %v761_v26  ;;  %v1068_v0 = vmul.f32 %v3590_v14, %v2796_v52  ;;  %v747_v30 = vadd.f32 %v2607_v34, %v683_v6  ;;  %v3597_v43 = vld [vmem:[#allocation129_spill] sm:$0xff]  ;;  %v3604_v14 = vld [vmem:[#allocation134_spill] sm:$0xff] }
 0x14f   :  { %v713_v2 = vadd.f32 %v3592_v54, %v3591_v62  ;;  %v849_v60 = vadd.f32 %v3593_v21, %v795_v38  ;;  %v926_v31 = vmul.f32 %v3594_v58, %v2734_v55  ;;  %v838_v42 = vmul.f32 %v3595_v36, %v2667_v32  ;;  %v3598_v26 = vld [vmem:[#allocation109_spill] sm:$0xff] }
 0x150   :  { %v921_v48 = vadd.f32 %v918_v8, %v857_v63  ;;  %v879_v33 = vadd.f32 %v3596_v9, %v825_v44  ;;  %v811_v46 = vadd.f32 %v808_v28, %v747_v30  ;;  %v990_v29 = vmul.f32 %v3597_v43, %v2767_v12  ;;  %v3599_v8 = vld [vmem:[#allocation130_spill] sm:$0xff]  ;;  %v3600_v38 = vld [vmem:[#allocation89_spill] sm:$0xff] }
 0x151   :  { %v777_v34 = vadd.f32 %v3598_v26, %v713_v2  ;;  %v913_v27 = vadd.f32 %v910_v41, %v849_v60  ;;  %v1054_v63 = vmul.f32 %v3599_v8, %v2796_v52  ;;  %v3601_v62 = vld [vmem:[#allocation85_spill] sm:$0xff]  ;;  %v3603_v44 = vld [vmem:[#allocation110_spill] sm:$0xff]  ;;  %v956_v2 = vmul.f32 %v3604_v14, %v2734_v55 }
 0x152   :  { %v985_v6 = vadd.f32 %v982_v22, %v921_v48  ;;  %v705_v54 = vadd.f32 %v3601_v62, %v3600_v38  ;;  %v943_v21 = vadd.f32 %v940_v1, %v879_v33  ;;  %v865_v49 = vadd.f32 %v3602_v39, %v811_v46  ;;  %v3605_v22 = vld [vmem:[#allocation104_spill] sm:$0xff]  ;;  %v3606_v60 = vld [vmem:[#allocation133_spill] sm:$0xff]  ;;  %v3608_v1 = vld [vmem:[#allocation142_spill] sm:$0xff] }
 0x153   :  { %v841_v36 = vadd.f32 %v838_v42, %v777_v34  ;;  %v830_v28 = vmul.f32 %v3603_v44, %v2667_v32  ;;  %v977_v9 = vadd.f32 %v974_v40, %v913_v27  ;;  %v1020_v38 = vmul.f32 %v3607_v24, %v2767_v12  ;;  %v3609_v33 = vld [vmem:[#allocation153_spill] sm:$0xff]  ;;  %v3611_v27 = vld [vmem:[#allocation144_spill] sm:$0xff] }
 0x154   :  { %v1049_v30 = vadd.f32 %v1046_v50, %v985_v6  ;;  %v769_v41 = vadd.f32 %v3605_v22, %v705_v54  ;;  %v1007_v48 = vadd.f32 %v1004_v5, %v943_v21  ;;  %v948_v39 = vmul.f32 %v3608_v1, %v2734_v55  ;;  %v3613_v21 = vld [vmem:[#allocation66_spill] sm:$0xff] }
 0x155   :  { %v895_v26 = vadd.f32 %v3606_v60, %v841_v36  ;;  %v1041_v42 = vadd.f32 %v1038_v11, %v977_v9  ;;  %v929_v50 = vadd.f32 %v926_v31, %v865_v49  ;;  %v669_v46 = vadd.f32 %v3609_v33, %v605_v7  ;;  %v3610_v36 = vld [vmem:[#allocation137_spill] sm:$0xff] }
 0x156   :  { %1099 = vrot.lane.b32.xlu1 %v1049_v30, %s1415_s13  ;;  %v833_v40 = vadd.f32 %v830_v28, %v769_v41  ;;  %v2873_v34 = vadd.f32 %v2785_v20, %v2777_v13  ;;  %v1071_v5 = vadd.f32 %v1068_v0, %v1007_v48  ;;  %v1084_v6 = vmul.f32 %v3610_v36, %v2796_v52  ;;  %v3612_v49 = vld [vmem:[#allocation141_spill] sm:$0xff]  ;;  %v3616_v41 = vld [vmem:[#allocation92_spill] sm:$0xff] }
 0x157   :  { %v1012_v62 = vmul.f32 %v3611_v27, %v2767_v12  ;;  %1090 = vrot.lane.b32.xlu0 %v1041_v42, %s1416_s4  ;;  %v993_v54 = vadd.f32 %v990_v29, %v929_v50  ;;  %v959_v11 = vadd.f32 %v956_v2, %v895_v26  ;;  %v733_v7 = vadd.f32 %v3613_v21, %v669_v46  ;;  %v3614_v20 = vld [vmem:[#allocation145_spill] sm:$0xff]  ;;  %v3618_v26 = vld [vmem:[#allocation162_spill] sm:$0xff] }
 0x158   :  { %v887_v31 = vadd.f32 %v3612_v49, %v833_v40  ;;  %v2885_v13 = vsel %vm591_vm8, %v2790_v10, 0.0  ;;  %v1076_v0 = vmul.f32 %v3614_v20, %v2796_v52  ;;  %v912_v28 = vmul.f32 %v3584_v35, %v2738_v57  ;;  %v3615_v30 = vld [vmem:[#allocation65_spill] sm:$0xff]  ;;  %v3617_v10 = vld [vmem:[#allocation79_spill] sm:$0xff]  ;;  %v3620_v40 = vld [vmem:[#allocation64_spill] sm:$0xff] }
 0x159   :  { %v604_v9 = vadd.f32 %v3615_v30, %v2681_v53  ;;  %v1057_v29 = vadd.f32 %v1054_v63, %v993_v54  ;;  %v1023_v2 = vadd.f32 %v1020_v38, %v959_v11  ;;  %v797_v48 = vadd.f32 %v3616_v41, %v733_v7  ;;  %v3619_v50 = vld [vmem:[#allocation165_spill] sm:$0xff]  ;;  %v3621_v38 = vld [vmem:[#allocation128_spill] sm:$0xff] }
 0x15a   :  { %1117 = vrot.lane.b32.xlu1 %v1071_v5, %s1417_s12  ;;  %v951_v22 = vadd.f32 %v948_v39, %v887_v31  ;;  %v976_v47 = vmul.f32 %v3585_v51, %v2771_v3  ;;  %v793_v42 = vmul.f32 %v3526_v56, %v3618_v26  ;;  %v612_v33 = vadd.f32 %v3620_v40, %v3619_v50  ;;  %v3622_v5 = vld [vmem:[#allocation99_spill] sm:$0xff]  ;;  %v3623_v11 = vld [vmem:[#allocation161_spill] sm:$0xff]  ;;  %v3624_v31 = vld [vmem:[#allocation80_spill] sm:$0xff] }
 0x15b   :  { %v668_v60 = vadd.f32 %v3617_v10, %v604_v9  ;;  %1108 = vrot.lane.b32.xlu0 %v1057_v29, %s1418_s7  ;;  %v1087_v53 = vadd.f32 %v1084_v6, %v1023_v2  ;;  %v851_v39 = vadd.f32 %v3621_v38, %v797_v48  ;;  %v1040_v46 = vmul.f32 %v3586_v37, %v2885_v13  ;;  %v3625_v7 = vld [vmem:[#allocation164_spill] sm:$0xff]  ;;  %v3626_v9 = vld [vmem:[#allocation154_spill] sm:$0xff] }
 0x15c   :  { %v1015_v63 = vadd.f32 %v1012_v62, %v951_v22  ;;  %v911_v49 = vmul.f32 %v3584_v35, %v3623_v11  ;;  %v676_v56 = vadd.f32 %v3624_v31, %v612_v33  ;;  %v801_v21 = vmul.f32 %v3528_v16, %v3618_v26  ;;  %v3627_v22 = vld [vmem:[#allocation101_spill] sm:$0xff] }
 0x15d   :  { %v732_v54 = vadd.f32 %v3622_v5, %v668_v60  ;;  %v915_v62 = vadd.f32 %v912_v28, %v851_v39  ;;  %v975_v30 = vmul.f32 %v3585_v51, %v3625_v7  ;;  %v677_v29 = vadd.f32 %v3626_v9, %v2792_v17  ;;  %v3628_v51 = vld [vmem:[#allocation69_spill] sm:$0xff]  ;;  %v3629_v17 = vld [vmem:[#allocation155_spill] sm:$0xff]  ;;  %v3630_v60 = vld [vmem:[#allocation132_spill] sm:$0xff] }
 0x15e   :  { %1135 = vrot.lane.b32.xlu1 %v1087_v53, %s1419_s19  ;;  %v1079_v6 = vadd.f32 %v1076_v0, %v1015_v63  ;;  %v1039_v35 = vmul.f32 %v3586_v37, %v2763_v25  ;;  %v740_v41 = vadd.f32 %v3627_v22, %v676_v56  ;;  %v919_v16 = vmul.f32 %v3581_v19, %v3623_v11  ;;  %v3631_v53 = vld [vmem:[#allocation93_spill] sm:$0xff]  ;;  %v3632_v63 = vld [vmem:[#allocation70_spill] sm:$0xff]  ;;  %v3633_v39 = vld [vmem:[#allocation96_spill] sm:$0xff] }
 0x15f   :  { %v796_v2 = vadd.f32 %v793_v42, %v732_v54  ;;  %v979_v0 = vadd.f32 %v976_v47, %v915_v62  ;;  %v983_v28 = vmul.f32 %v3582_v15, %v3625_v7  ;;  %v741_v48 = vadd.f32 %v3628_v51, %v677_v29  ;;  %v3634_v5 = vld [vmem:[#allocation150_spill] sm:$0xff]  ;;  %v3638_v29 = vld [vmem:[#allocation81_spill] sm:$0xff] }
 0x160   :  { %1126 = vrot.lane.b32.xlu0 %v1079_v6, %s1420_s29  ;;  %v685_v10 = vadd.f32 %v3629_v17, %v2800_v61  ;;  %v804_v37 = vadd.f32 %v801_v21, %v740_v41  ;;  %v1047_v50 = vmul.f32 %v3583_v18, %v2763_v25  ;;  %v920_v40 = vmul.f32 %v3581_v19, %v2738_v57  ;;  %v3635_v56 = vld [vmem:[#allocation138_spill] sm:$0xff]  ;;  %v3636_v19 = vld [vmem:[#allocation136_spill] sm:$0xff]  ;;  %v3640_v51 = vld [vmem:[#allocation61_spill] sm:$0xff] }
 0x161   :  { %v850_v42 = vadd.f32 %v3630_v60, %v796_v2  ;;  %v1043_v33 = vadd.f32 %v1040_v46, %v979_v0  ;;  %v805_v47 = vadd.f32 %v3631_v53, %v741_v48  ;;  %v620_v54 = vadd.f32 %v3634_v5, %v3633_v39  ;;  %v3637_v62 = vld [vmem:[#allocation94_spill] sm:$0xff]  ;;  %v3641_v17 = vld [vmem:[#allocation140_spill] sm:$0xff] }
 0x162   :  { %v749_v38 = vadd.f32 %v3632_v63, %v685_v10  ;;  %v858_v61 = vadd.f32 %v3635_v56, %v804_v37  ;;  %v984_v21 = vmul.f32 %v3582_v15, %v2771_v3  ;;  %v1048_v6 = vmul.f32 %v3583_v18, %v2885_v13  ;;  %v3639_v15 = vld [vmem:[#allocation100_spill] sm:$0xff]  ;;  %v3646_v56 = vld [vmem:[#allocation146_spill] sm:$0xff] }
 0x163   :  { %v914_v31 = vadd.f32 %v911_v49, %v850_v42  ;;  %v859_v46 = vadd.f32 %v3636_v19, %v805_v47  ;;  %v684_v2 = vadd.f32 %v3638_v29, %v620_v54  ;;  %v809_v22 = vmul.f32 %v3530_v45, %v3618_v26  ;;  %v3642_v42 = vld [vmem:[#allocation111_spill] sm:$0xff]  ;;  %v3643_v47 = vld [vmem:[#allocation112_spill] sm:$0xff]  ;;  %v3644_v54 = vld [vmem:[#allocation102_spill] sm:$0xff] }
 0x164   :  { %1094 = vrot.lane.b32.xlu0 %v1043_v33, %s1416_s4  ;;  %v813_v9 = vadd.f32 %v3637_v62, %v749_v38  ;;  %v922_v41 = vadd.f32 %v919_v16, %v858_v61  ;;  %v928_v0 = vmul.f32 %v3594_v58, %v2738_v57  ;;  %v634_v48 = vadd.f32 %v3640_v51, %v3639_v15  ;;  %v3647_v62 = vld [vmem:[#allocation76_spill] sm:$0xff]  ;;  %v3652_v15 = vld [vmem:[#allocation147_spill] sm:$0xff] }
 0x165   :  { %v978_v49 = vadd.f32 %v975_v30, %v914_v31  ;;  %v923_v18 = vadd.f32 %v920_v40, %v859_v46  ;;  %v992_v60 = vmul.f32 %v3597_v43, %v2771_v3  ;;  %v748_v37 = vadd.f32 %v3642_v42, %v684_v2  ;;  %v3655_v42 = vld [vmem:[#allocation139_spill] sm:$0xff] }
 0x166   :  { %v867_v10 = vadd.f32 %v3641_v17, %v813_v9  ;;  %v986_v53 = vadd.f32 %v983_v28, %v922_v41  ;;  %v698_v45 = vadd.f32 %v3643_v47, %v634_v48  ;;  %v823_v30 = vmul.f32 %v3532_v59, %v3618_v26  ;;  %v3645_v28 = vld [vmem:[#allocation57_spill] sm:$0xff]  ;;  %v3651_v41 = vld [vmem:[#allocation59_spill] sm:$0xff] }
 0x167   :  { %v1042_v33 = vadd.f32 %v1039_v35, %v978_v49  ;;  %v987_v16 = vadd.f32 %v984_v21, %v923_v18  ;;  %v1056_v63 = vmul.f32 %v3599_v8, %v2885_v13  ;;  %v812_v38 = vadd.f32 %v809_v22, %v748_v37  ;;  %v3649_v22 = vld [vmem:[#allocation125_spill] sm:$0xff]  ;;  %v3650_v49 = vld [vmem:[#allocation159_spill] sm:$0xff] }
 0x168   :  { %v927_v40 = vmul.f32 %v3594_v58, %v3623_v11  ;;  %v1050_v39 = vadd.f32 %v1047_v50, %v986_v53  ;;  %v931_v5 = vadd.f32 %v928_v0, %v867_v10  ;;  %v762_v35 = vadd.f32 %v3644_v54, %v698_v45  ;;  %v3654_v10 = vld [vmem:[#allocation77_spill] sm:$0xff]  ;;  %v3657_v53 = vld [vmem:[#allocation156_spill] sm:$0xff] }
 0x169   :  { %1092 = vrot.lane.b32.xlu1 %v1042_v33, %s1416_s4  ;;  %v699_v31 = vadd.f32 %v3645_v28, %v2802_v4  ;;  %v866_v61 = vadd.f32 %v3646_v56, %v812_v38  ;;  %v991_v59 = vmul.f32 %v3597_v43, %v3625_v7  ;;  %v1055_v21 = vmul.f32 %v3599_v8, %v2763_v25  ;;  %v3648_v4 = vld [vmem:[#allocation124_spill] sm:$0xff]  ;;  %v3656_v33 = vld [vmem:[#allocation166_spill] sm:$0xff] }
 0x16a   :  { %v941_v58 = vmul.f32 %v3588_v23, %v3623_v11  ;;  %1101 = vrot.lane.b32.xlu0 %v1050_v39, %s1415_s13  ;;  %v1051_v50 = vadd.f32 %v1048_v6, %v987_v16  ;;  %v995_v19 = vadd.f32 %v992_v60, %v931_v5  ;;  %v826_v46 = vadd.f32 %v823_v30, %v762_v35  ;;  %v3653_v6 = vld [vmem:[#allocation95_spill] sm:$0xff]  ;;  %v3658_v30 = vld [vmem:[#allocation148_spill] sm:$0xff]  ;;  %v3660_v5 = vld [vmem:[#allocation86_spill] sm:$0xff] }
 0x16b   :  { %v763_v9 = vadd.f32 %v3647_v62, %v699_v31  ;;  %v930_v29 = vadd.f32 %v927_v40, %v866_v61  ;;  %v1005_v2 = vmul.f32 %v3648_v4, %v3625_v7  ;;  %v1069_v43 = vmul.f32 %v3649_v22, %v2763_v25  ;;  %v3659_v40 = vld [vmem:[#allocation97_spill] sm:$0xff] }
 0x16c   :  { %v707_v8 = vadd.f32 %v3651_v41, %v3650_v49  ;;  %v1059_v0 = vadd.f32 %v1056_v63, %v995_v19  ;;  %v880_v51 = vadd.f32 %v3652_v15, %v826_v46  ;;  %v942_v18 = vmul.f32 %v3588_v23, %v2738_v57  ;;  %v3663_v19 = vld [vmem:[#allocation167_spill] sm:$0xff]  ;;  %v3664_v46 = vld [vmem:[#allocation62_spill] sm:$0xff] }
 0x16d   :  { %1103 = vrot.lane.b32.xlu1 %v1051_v50, %s1415_s13  ;;  %v827_v48 = vadd.f32 %v3653_v6, %v763_v9  ;;  %v994_v17 = vadd.f32 %v991_v59, %v930_v29  ;;  %v886_v37 = vmul.f32 0.0, %v3655_v42  ;;  %v642_v47 = vadd.f32 %v3657_v53, %v3656_v33  ;;  %v3662_v50 = vld [vmem:[#allocation15_spill] sm:$0xff]  ;;  %v3671_v53 = vld [vmem:[#allocation131_spill] sm:$0xff] }
 0x16e   :  { %v771_v60 = vadd.f32 %v3654_v10, %v707_v8  ;;  %1112 = vrot.lane.b32.xlu0 %v1059_v0, %s1418_s7  ;;  %v944_v45 = vadd.f32 %v941_v58, %v880_v51  ;;  %v1006_v63 = vmul.f32 %v3648_v4, %v2771_v3  ;;  %v950_v38 = vmul.f32 %v3608_v1, %v2738_v57  ;;  %v3665_v9 = vld [vmem:[#allocation90_spill] sm:$0xff]  ;;  %v3667_v0 = vld [vmem:[#allocation87_spill] sm:$0xff]  ;;  %v3668_v51 = vld [vmem:[#allocation113_spill] sm:$0xff] }
 0x16f   :  { %v881_v16 = vadd.f32 %v3658_v30, %v827_v48  ;;  %v1058_v23 = vadd.f32 %v1055_v21, %v994_v17  ;;  %v706_v54 = vadd.f32 %v3660_v5, %v642_v47  ;;  %v831_v35 = vmul.f32 %v3603_v44, %v3618_v26  ;;  %v3661_v21 = vld [vmem:[#allocation108_spill] sm:$0xff]  ;;  %v3669_v17 = vld [vmem:[#allocation63_spill] sm:$0xff] }
 0x170   :  { %v835_v39 = vadd.f32 %v3659_v40, %v771_v60  ;;  %v1008_v28 = vadd.f32 %v1005_v2, %v944_v45  ;;  %v1070_v56 = vmul.f32 %v3649_v22, %v2885_v13  ;;  %v1014_v61 = vmul.f32 %v3611_v27, %v2771_v3  ;;  %v3673_v40 = vld [vmem:[#allocation98_spill] sm:$0xff]  ;;  %v3674_v5 = vld [vmem:[#allocation60_spill] sm:$0xff] }
 0x171   :  { %v945_v31 = vadd.f32 %v942_v18, %v881_v16  ;;  %1110 = vrot.lane.b32.xlu1 %v1058_v23, %s1418_s7  ;;  %v770_v58 = vadd.f32 %v3661_v21, %v706_v54  ;;  %v885_v44 = vmul.f32 %v3655_v42, %v3662_v50  ;;  %v650_v62 = vadd.f32 %v3664_v46, %v3663_v19  ;;  %v3675_v54 = vld [vmem:[#allocation82_spill] sm:$0xff] }
 0x172   :  { %v889_v59 = vadd.f32 %v886_v37, %v835_v39  ;;  %v3666_v29 = vstv %s3352_s22  ;;  %v1072_v2 = vadd.f32 %v1069_v43, %v1008_v28  ;;  %v1078_v49 = vmul.f32 %v3614_v20, %v2885_v13  ;;  %v3670_v37 = vld [vmem:[#allocation160_spill] sm:$0xff] }
 0x173   :  { %v752_v4 = vmul.f32 %v3666_v29, %v3665_v9  ;;  %v1009_v22 = vadd.f32 %v1006_v63, %v945_v31  ;;  %v834_v8 = vadd.f32 %v831_v35, %v770_v58  ;;  %v714_v15 = vadd.f32 %v3667_v0, %v650_v62  ;;  %v3676_v58 = vld [vmem:[#allocation16_spill] sm:$0xff] }
 0x174   :  { %v953_v41 = vadd.f32 %v950_v38, %v889_v59  ;;  %v839_v6 = vmul.f32 %v3668_v51, %v3618_v26  ;;  %1119 = vrot.lane.b32.xlu0 %v1072_v2, %s1417_s12  ;;  %v949_v18 = vmul.f32 %v3608_v1, %v3623_v11  ;;  %v1013_v43 = vmul.f32 %v3611_v27, %v3625_v7  ;;  %v3680_v0 = vld [vmem:[#allocation143_spill] sm:$0xff] }
 0x175   :  { %v1073_v48 = vadd.f32 %v1070_v56, %v1009_v22  ;;  %v715_v10 = vadd.f32 %v3669_v17, %v2873_v34  ;;  %v888_v42 = vadd.f32 %v885_v44, %v834_v8  ;;  %v778_v33 = vadd.f32 %v3670_v37, %v714_v15  ;;  %v3672_v34 = vld [vmem:[#allocation78_spill] sm:$0xff]  ;;  %v3679_v8 = vld [vmem:[#allocation163_spill] sm:$0xff] }
 0x176   :  { %v1017_v60 = vadd.f32 %v1014_v61, %v953_v41  ;;  %v893_v47 = vmul.f32 %v3671_v53, %v3662_v50  ;;  %v1077_v1 = vmul.f32 %v3614_v20, %v2763_v25  ;;  %v957_v27 = vmul.f32 %v3604_v14, %v3623_v11 }
 0x177   :  { %1121 = vrot.lane.b32.xlu1 %v1073_v48, %s1417_s12  ;;  %v779_v45 = vadd.f32 %v3672_v34, %v715_v10  ;;  %v894_v30 = vmul.f32 0.0, %v3671_v53  ;;  %v952_v63 = vadd.f32 %v949_v18, %v888_v42  ;;  %v842_v38 = vadd.f32 %v839_v6, %v778_v33 }
 0x178   :  { %v1081_v16 = vadd.f32 %v1078_v49, %v1017_v60  ;;  %v958_v23 = vmul.f32 %v3604_v14, %v2738_v57  ;;  %v690_v20 = vadd.f32 %v3675_v54, %v3674_v5  ;;  %v815_v35 = vstv %s3001_s17  ;;  %v3677_v49 = vld [vmem:[#allocation91_spill] sm:$0xff] }
 0x179   :  { %v843_v39 = vadd.f32 %v3673_v40, %v779_v45  ;;  %v869_v28 = vstv %s3007_s6  ;;  %v1016_v31 = vadd.f32 %v1013_v43, %v952_v63  ;;  %v896_v56 = vadd.f32 %v893_v47, %v842_v38 }
 0x17a   :  { %1130 = vrot.lane.b32.xlu0 %v1081_v16, %s1420_s29  ;;  %v1021_v61 = vmul.f32 %v3607_v24, %v3625_v7  ;;  %v816_v57 = vmul.f32 %v815_v35, %v2667_v32  ;;  %v1022_v59 = vmul.f32 %v3607_v24, %v2771_v3  ;;  %v754_v21 = vadd.f32 %v752_v4, %v690_v20 }
 0x17b   :  { %v897_v14 = vadd.f32 %v894_v30, %v843_v39  ;;  %v870_v44 = vmul.f32 %v869_v28, %v3676_v58  ;;  %v1080_v19 = vadd.f32 %v1077_v1, %v1016_v31  ;;  %v960_v46 = vadd.f32 %v957_v27, %v896_v56  ;;  %v3682_v31 = vld [vmem:[#allocation53_spill] sm:$0xff] }
 0x17c   :  { %v1085_v62 = vmul.f32 %v3610_v36, %v2763_v25  ;;  %v933_v9 = vstv %s3023_s21  ;;  %v1086_v2 = vmul.f32 %v3610_v36, %v2885_v13  ;;  %v818_v32 = vadd.f32 %v816_v57, %v754_v21  ;;  %v3681_v36 = vld [vmem:[#allocation83_spill] sm:$0xff] }
 0x17d   :  { %v961_v29 = vadd.f32 %v958_v23, %v897_v14  ;;  %v934_v22 = vmul.f32 %v933_v9, %v2734_v55  ;;  %v3678_v41 = vstv %s3352_s22  ;;  %1128 = vrot.lane.b32.xlu1 %v1080_v19, %s1420_s29  ;;  %v1024_v24 = vadd.f32 %v1021_v61, %v960_v46  ;;  %s1206_s22 = sshll.u32 %s1421_s0, 4  ;;  %s1207_s22 = int_to_ptr.vmem [resolvable:$true] %s1206_s22 }
 0x17e   :  { %v753_v3 = vmul.f32 %v3678_v41, %v3677_v49  ;;  %v997_v4 = vstv %s3035_s8  ;;  %v627_v15 = vadd.f32 %v3680_v0, %v3679_v8  ;;  %v872_v6 = vadd.f32 %v870_v44, %v818_v32  ;;  %s1377_s26 = scalar_lea.vmem %s1207_s22, 64  ;;  %p1382_p11 = scmp.lt.s32.totalorder %s1207_s22, %s1207_s22 }
 0x17f   :  { %v1025_v51 = vadd.f32 %v1022_v59, %v961_v29  ;;  %v998_v48 = vmul.f32 %v997_v4, %v2767_v12  ;;  %v1088_v18 = vadd.f32 %v1085_v62, %v1024_v24  ;;  %v1061_v43 = vstv %s3046_s14  ;;  %p1378_p10 = scmp.ne.s32.totalorder %s1207_s22, %s1377_s26  ;;  %p1383_p12 = scmp.lt.s32.totalorder %s1377_s26, %s1377_s26 }
 0x180   :  { %v691_v13 = vadd.f32 %v3681_v36, %v627_v15  ;;  %v817_v55 = vmul.f32 %v815_v35, %v3618_v26  ;;  %v936_v10 = vadd.f32 %v934_v22, %v872_v6  ;;  %v1062_v60 = vmul.f32 %v1061_v43, %v2796_v52 }
 0x181   :  { %v1089_v17 = vadd.f32 %v1086_v2, %v1025_v51  ;;  %1137 = vrot.lane.b32.xlu0 %v1088_v18, %s1419_s19  ;;  %v871_v37 = vmul.f32 %v869_v28, %v3662_v50  ;;  %v935_v1 = vmul.f32 %v933_v9, %v3623_v11  ;;  %v999_v26 = vmul.f32 %v997_v4, %v3625_v7  ;;  %p1384_p13 = por %p1383_p12, %p1382_p11 }
 0x182   :  { %v755_v42 = vadd.f32 %v753_v3, %v691_v13  ;;  %v1000_v33 = vadd.f32 %v998_v48, %v936_v10  ;;  %v1063_v34 = vmul.f32 %v1061_v43, %v2763_v25  ;;  %vm1114_vm5 = vcmp.lt.s32.totalorder %v3682_v31, 16 }
 0x183   :  { %1139 = vrot.lane.b32.xlu1 %v1089_v17, %s1419_s19  ;;  %vm1105_vm6 = vcmp.lt.s32.totalorder %v3682_v31, 32  ;;  %vm1132_vm10 = vcmp.lt.s32.totalorder %v3682_v31, 96  ;;  %vm1096_vm11 = vcmp.lt.s32.totalorder %v3682_v31, 48  ;;  %vm1123_vm12 = vcmp.lt.s32.totalorder %v3682_v31, 112  ;;  %p1385_p0 = pnand %p1384_p13, %p1378_p10 }
 0x184   :  { %v819_v53 = vadd.f32 %v817_v55, %v755_v42  ;;  %v1064_v12 = vadd.f32 %v1062_v60, %v1000_v33  ;;  %vm1141_vm13 = vcmp.lt.s32.totalorder %v3682_v31, 80  ;;  %v3683_v42 = vld [vmem:[#allocation11_spill] sm:$0xff]  ;;  %v3684_v33 = vlaneseq }
 0x186   :  { %v873_v47 = vadd.f32 %v871_v37, %v819_v53  ;;  %vm1197_vm14 = vcmp.lt.s32.totalorder %v3684_v33, 256 }
 0x188   :  { %v937_v27 = vadd.f32 %v935_v1, %v873_v47 }
 0x18a   :  { %v1001_v45 = vadd.f32 %v999_v26, %v937_v27 }
 0x18c   :  { %v1065_v52 = vadd.f32 %v1063_v34, %v1001_v45 }
 0x1c8   :  { %v1100_v30 = vpop.permute.xlu1 %1099 }
 0x1c9   :  { %v1091_v16 = vpop.permute.xlu0 %1090 }
 0x1cc   :  { %v1118_v38 = vpop.permute.xlu1 %1117 }
 0x1cd   :  { %v1109_v63 = vpop.permute.xlu0 %1108 }
 0x1d0   :  { %v1136_v23 = vpop.permute.xlu1 %1135 }
 0x1d2   :  { %v1127_v50 = vpop.permute.xlu0 %1126 }
 0x1d6   :  { %v1095_v40 = vpop.permute.xlu0 %1094 }
 0x1d7   :  { %v1098_v44 = vsel %vm1096_vm11, %v1095_v40, %v1091_v16 }
 0x1db   :  { %v1093_v39 = vpop.permute.xlu1 %1092 }
 0x1dc   :  { %v1102_v5 = vpop.permute.xlu0 %1101  ;;  %v1097_v62 = vsel %vm1096_vm11, %v1091_v16, %v1093_v39 }
 0x1dd   :  { %v1106_v59 = vsel %vm1105_vm6, %v1100_v30, %v1102_v5 }
 0x1de   :  { %v1145_v22 = vadd.f32 %v1106_v59, %v1097_v62 }
 0x1df   :  { %v1104_v54 = vpop.permute.xlu1 %1103 }
 0x1e0   :  { %v1113_v20 = vpop.permute.xlu0 %1112  ;;  %v1107_v57 = vsel %vm1105_vm6, %v1104_v54, %v1100_v30 }
 0x1e1   :  { %v1116_v7 = vsel %vm1114_vm5, %v1113_v20, %v1109_v63  ;;  %v1144_v9 = vadd.f32 %v1107_v57, %v1098_v44 }
 0x1e2   :  { %v1146_v21 = vadd.f32 %v1116_v7, %v1064_v12 }
 0x1e3   :  { %v1111_v35 = vpop.permute.xlu1 %1110 }
 0x1e4   :  { %v1115_v56 = vsel %vm1114_vm5, %v1109_v63, %v1111_v35  ;;  %v1150_v24 = vadd.f32 %v1146_v21, %v1144_v9 }
 0x1e5   :  { %v1147_v19 = vadd.f32 %v1115_v56, %v1065_v52 }
 0x1e6   :  { %v1120_v11 = vpop.permute.xlu0 %1119 }
 0x1e7   :  { %v1125_v46 = vsel %vm1123_vm12, %v1118_v38, %v1120_v11  ;;  %v1151_v0 = vadd.f32 %v1147_v19, %v1145_v22 }
 0x1e9   :  { %v1122_v28 = vpop.permute.xlu1 %1121 }
 0x1ea   :  { %v1124_v29 = vsel %vm1123_vm12, %v1120_v11, %v1122_v28 }
 0x1ec   :  { %v1131_v25 = vpop.permute.xlu0 %1130 }
 0x1ef   :  { %v1129_v61 = vpop.permute.xlu1 %1128 }
 0x1f0   :  { %v1134_v14 = vsel %vm1132_vm10, %v1127_v50, %v1129_v61  ;;  %v1133_v58 = vsel %vm1132_vm10, %v1129_v61, %v1131_v25 }
 0x1f1   :  { %v1148_v2 = vadd.f32 %v1134_v14, %v1125_v46  ;;  %v1149_v49 = vadd.f32 %v1133_v58, %v1124_v29 }
 0x1f3   :  { %v1138_v32 = vpop.permute.xlu0 %1137 }
 0x1f4   :  { %v1143_v41 = vsel %vm1141_vm13, %v1136_v23, %v1138_v32 }
 0x1f5   :  { %v1140_v3 = vpop.permute.xlu1 %1139  ;;  %v1152_v4 = vadd.f32 %v1148_v2, %v1143_v41 }
 0x1f6   :  { %v1142_v8 = vsel %vm1141_vm13, %v1138_v32, %v1140_v3 }
 0x1f7   :  { %v1153_v15 = vadd.f32 %v1149_v49, %v1142_v8  ;;  %v1154_v51 = vadd.f32 %v1152_v4, %v1150_v24 }
 0x1f9   :  { %v1155_v6 = vadd.f32 %v1153_v15, %v1151_v0  ;;  %v1316_v48 = vmul.f32 -1.442695, %v1154_v51 }
 0x1fb   :  { %v1317_v18 = vmul.f32 -1.442695, %v1155_v6  ;;  %1337 = vpow2.f32 %v1316_v48 }
 0x1fd   :  { %1339 = vpow2.f32 %v1317_v18 }
 0x208   :  { %v1338_v43 = vpop.eup %1337 }
 0x209   :  { %v1162_v13 = vadd.f32 1.0, %v1338_v43 }
 0x20a   :  { %v1340_v36 = vpop.eup %1339 }
 0x20b   :  { %v1163_v55 = vadd.f32 1.0, %v1340_v36  ;;  %1341 = vrcp.f32 %v1162_v13 }
 0x20d   :  { %1343 = vrcp.f32 %v1163_v55 }
 0x218   :  { %v1342_v17 = vpop.eup %1341 }
 0x21a   :  { %v1344_v10 = vpop.eup %1343 }
 0x21b   :  { %v1170_v60 = vcombine.low %v1342_v17, %v1344_v10 }
 0x21d   :  { %v1177_v37 = vrot.slane %v1170_v60, %v3683_v42 }
 0x21f   :  { %v1178_v53 = vcombine.high %v1177_v37, %v1177_v37  ;;  %v1185_v12 = vrot.slane %v1177_v37, %v3683_v42 }
 0x221   :  { %v1192_v47 = vrot.slane %v1178_v53, %v3683_v42  ;;  %1199 = vst.msk [vmem:[#allocation7] sm:$0x3] %vm1197_vm14, %v1185_v12 }
 0x223   :  { %1200 = vst.msk [vmem:[#allocation7 + $0x2] sm:$0x3] %vm1197_vm14, %v1192_v47 }
 0x224   :  { %1388 = shalt.err (!%p1385_p0)
}
 0x225   :  { %s3685_s16 = smov 2   ;;  %s3686_s24 = sld [smem:[#allocation168_spill]] }
 0x22b   :  { %1212 = dma.vmem_to_hbm [thread:$0]  %s1207_s22, 64, %s3686_s24, [#allocation4], %s1415_s13, %s1415_s13, %s3685_s16  }
 0x22c   :  { %1401 = dma.done.wait [#allocation4], 64  }
 0x22d   :  { %1402 = vsyncadd [#allocation4], 4294967232 }
 0x22e   :  { %1216 = vsyncpa [#allocation3], 1 }
 0x22f   :  { %1217 = vsyncpa [#allocation4], 1 }
 0x230   :  { %1218 = vsyncpa [#allocation5], 1 }

</bundles_post_ra>
